<compile_context>
chip_gen: v5e
topology: v5e:2x2
jax: 0.10.0
libtpu: 0.0.40
codegen_flags: <defaults>
</compile_context>

<pallas_src>
import math
import functools

import jax
import jax.numpy as jnp
from jax.experimental import pallas as pl
from jax.experimental.pallas import tpu as pltpu


def _round_up(x, m):
    return (x + m - 1) // m * m


def _vmem_limit_bytes():
    """Generation-aware VMEM budget with headroom (v7x: 64 MiB physical)."""
    try:
        cap = pltpu.get_tpu_info().vmem_capacity_bytes
    except Exception:
        cap = 64 * 1024 * 1024
    return int(min(cap * 3 // 4, 100 * 1024 * 1024))


def rnn_encoder_kernel(maxlen_ref, gx_ref, len_ref, whh_ref, w1_ref, b1_ref,
                       out_ref, h_scr, c_scr):
    """Masked LSTM recurrence over one time-chunk + final linear on last step.

    maxlen_ref : (1,)                 i32  SMEM scalar-prefetch: max(lengths)
    gx_ref     : (T_CHUNK, Bblk, 4Hp) bf16 precomputed x@W_ih + bias (i,f,g,o)
    len_ref    : (Bblk, 1)            i32  valid lengths
    whh_ref    : (Hp, 4Hp)            bf16 W_hh transposed (zero-padded)
    w1_ref     : (Hp, Op)             bf16 linear_1 weight transposed (padded)
    b1_ref     : (1, Op)              f32
    out_ref    : (Bblk, Op)           f32  final output (written on last step)
    h_scr      : (Bblk, Hp)           bf16 persistent LSTM hidden state
    c_scr      : (Bblk, Hp)           f32  persistent LSTM cell state
    """
    t_idx = pl.program_id(1)
    t_chunk = gx_ref.shape[0]
    hidden_p = h_scr.shape[1]
    chunk_start = t_idx * t_chunk

    @pl.when(t_idx == 0)
    def _init():
        h_scr[...] = jnp.zeros_like(h_scr)
        c_scr[...] = jnp.zeros_like(c_scr)

    # Skip chunks that lie entirely past the longest valid sequence.
    @pl.when(chunk_start < maxlen_ref[0])
    def _run_chunk():
        lens = len_ref[...]                       # (Bblk, 1) i32, hoisted
        whh = whh_ref[...]                        # resident bf16 weights

        def step(i, carry):
            h_prev, c_prev = carry                # bf16 / f32, live in vregs
            # Only the recurrent matmul remains on the serial path.
            gates = (gx_ref[i].astype(jnp.float32)
                     + jnp.dot(h_prev, whh,
                               preferred_element_type=jnp.float32))

            # Gate slices are 128-lane aligned (hidden_p multiple of 128).
            i_g = jax.nn.sigmoid(gates[:, 0 * hidden_p:1 * hidden_p])
            f_g = jax.nn.sigmoid(gates[:, 1 * hidden_p:2 * hidden_p])
            g_g = jnp.tanh(gates[:, 2 * hidden_p:3 * hidden_p])
            o_g = jax.nn.sigmoid(gates[:, 3 * hidden_p:4 * hidden_p])

            c_new = f_g * c_prev + i_g * g_g
            h_new = o_g * jnp.tanh(c_new)

            # Freeze state past each row's true length (packed-LSTM semantics).
            valid = (chunk_start + i) < lens      # (Bblk, 1) bool
            h_next = jnp.where(valid, h_new.astype(jnp.bfloat16), h_prev)
            c_next = jnp.where(valid, c_new, c_prev)
            return (h_next, c_next)

        h_fin, c_fin = jax.lax.fori_loop(
            0, t_chunk, step, (h_scr[...], c_scr[...]),
            unroll=min(t_chunk, 8))
        # One scratch write per chunk (not per step).
        h_scr[...] = h_fin
        c_scr[...] = c_fin

    @pl.when(t_idx == pl.num_programs(1) - 1)
    def _finalize():
        # dropout == identity (eval mode), then linear_1 (bf16 MXU, f32 acc).
        out_ref[...] = (jnp.dot(h_scr[...], w1_ref[...],
                                preferred_element_type=jnp.float32)
                        + b1_ref[...])


@functools.partial(jax.jit,
                   static_argnames=("hidden_size", "out_size",
                                    "time_chunk", "batch_block"))
def rnn_encoder_forward(x, lengths, params, *, hidden_size, out_size,
                        time_chunk=16, batch_block=16):
    """x: (batch, seq, in_size) f32; lengths: (batch,) -> (batch, out_size)."""
    batch, seq, in_size = x.shape
    H = hidden_size
    Hp = _round_up(H, 128)             # lane-pad hidden (gate blocks aligned)
    Op = _round_up(out_size, 128)      # lane-pad output (unmasked stores)
    Bp = _round_up(batch, 16)          # bf16 packs 16 rows per vreg group
    Bblk = min(batch_block, Bp)
    Bp = _round_up(Bp, Bblk)
    Tc = time_chunk
    Sp = _round_up(seq, Tc)

    def pad_gate_cols(w):              # (rows, 4*H) -> (rows, 4*Hp), per gate
        r = w.shape[0]
        return jnp.pad(w.reshape(r, 4, H),
                       ((0, 0), (0, 0), (0, Hp - H))).reshape(r, 4 * Hp)

    wih_p = pad_gate_cols(params["w_ih"].T)                                  # (in, 4Hp)
    whh_p = jnp.pad(pad_gate_cols(params["w_hh"].T), ((0, Hp - H), (0, 0)))  # (Hp, 4Hp)
    bias_p = pad_gate_cols((params["b_ih"] + params["b_hh"]).reshape(1, 4 * H))
    w1_p = jnp.pad(params["w1"].T, ((0, Hp - H), (0, Op - out_size)))        # (Hp, Op)
    b1_p = jnp.pad(params["b1"].reshape(1, -1), ((0, 0), (0, Op - out_size)))

    # --- Single-pass gx construction -------------------------------------
    # Transpose/pad the SMALL x first, fold the bias via a ones column, and
    # let the one big MXU matmul emit the padded, time-major, bf16 stream.
    x_tm = jnp.transpose(x, (1, 0, 2))                          # (S, B, in)
    x_tm = jnp.pad(x_tm, ((0, Sp - seq), (0, Bp - batch), (0, 0)))
    ones = jnp.ones((Sp, Bp, 1), x_tm.dtype)
    x_aug = jnp.concatenate([x_tm, ones], axis=-1)              # (Sp, Bp, in+1)
    wih_aug = jnp.concatenate([wih_p, bias_p], axis=0)          # (in+1, 4Hp)

    gx = jnp.dot(x_aug.reshape(Sp * Bp, in_size + 1).astype(jnp.bfloat16),
                 wih_aug.astype(jnp.bfloat16),
                 preferred_element_type=jnp.float32).astype(jnp.bfloat16)
    gx = gx.reshape(Sp, Bp, 4 * Hp)                             # time-major

    len_p = jnp.pad(lengths.astype(jnp.int32), (0, Bp - batch)).reshape(Bp, 1)
    max_len = jnp.max(lengths).astype(jnp.int32).reshape(1)

    grid = (Bp // Bblk, Sp // Tc)

    out = pl.pallas_call(
        rnn_encoder_kernel,
        out_shape=jax.ShapeDtypeStruct((Bp, Op), jnp.float32),
        grid_spec=pltpu.PrefetchScalarGridSpec(
            num_scalar_prefetch=1,                               # max(lengths)
            grid=grid,
            in_specs=[
                pl.BlockSpec((Tc, Bblk, 4 * Hp), lambda b, t, ml: (t, b, 0)),
                pl.BlockSpec((Bblk, 1), lambda b, t, ml: (b, 0)),
                pl.BlockSpec((Hp, 4 * Hp), lambda b, t, ml: (0, 0)),
                pl.BlockSpec((Hp, Op), lambda b, t, ml: (0, 0)),
                pl.BlockSpec((1, Op), lambda b, t, ml: (0, 0)),
            ],
            out_specs=pl.BlockSpec((Bblk, Op), lambda b, t, ml: (b, 0)),
            scratch_shapes=[pltpu.VMEM((Bblk, Hp), jnp.bfloat16),   # h state
                            pltpu.VMEM((Bblk, Hp), jnp.float32)],   # c state
        ),
        compiler_params=pltpu.CompilerParams(
            dimension_semantics=("parallel", "arbitrary"),  # batch || , time serial
            vmem_limit_bytes=_vmem_limit_bytes(),
        ),
    )(max_len, gx, len_p, whh_p.astype(jnp.bfloat16),
      w1_p.astype(jnp.bfloat16), b1_p)

    return out[:batch, :out_size]


def reference_forward(x, lengths, params):
    """Pure-JAX f32 reference (same masked-LSTM math) for correctness check."""
    batch, seq, in_size = x.shape
    hidden = params["w_hh"].shape[1]
    h = jnp.zeros((batch, hidden), jnp.float32)
    c = jnp.zeros((batch, hidden), jnp.float32)
    bias = params["b_ih"] + params["b_hh"]
    for t in range(seq):
        x_t = x[:, t, :]
        gates = x_t @ params["w_ih"].T + h @ params["w_hh"].T + bias
        i_g = jax.nn.sigmoid(gates[:, 0 * hidden:1 * hidden])
        f_g = jax.nn.sigmoid(gates[:, 1 * hidden:2 * hidden])
        g_g = jnp.tanh(gates[:, 2 * hidden:3 * hidden])
        o_g = jax.nn.sigmoid(gates[:, 3 * hidden:4 * hidden])
        c_new = f_g * c + i_g * g_g
        h_new = o_g * jnp.tanh(c_new)
        valid = (t < lengths).reshape(batch, 1)
        h = jnp.where(valid, h_new, h)
        c = jnp.where(valid, c_new, c)
    return h @ params["w1"].T + params["b1"]


def init_params(key, in_size, hidden_size, out_size):
    """Deterministic init matching PyTorch shapes (uniform +/- 1/sqrt(H))."""
    ks = jax.random.split(key, 6)
    s_lstm = 1.0 / math.sqrt(hidden_size)
    s_lin = 1.0 / math.sqrt(hidden_size)
    u = lambda k, shape, s: jax.random.uniform(k, shape, jnp.float32, -s, s)
    return {
        "w_ih": u(ks[0], (4 * hidden_size, in_size), s_lstm),
        "w_hh": u(ks[1], (4 * hidden_size, hidden_size), s_lstm),
        "b_ih": u(ks[2], (4 * hidden_size,), s_lstm),
        "b_hh": u(ks[3], (4 * hidden_size,), s_lstm),
        "w1":   u(ks[4], (out_size, hidden_size), s_lin),
        "b1":   u(ks[5], (out_size,), s_lin),
    }


if __name__ == "__main__":
    # Small shapes consistent with RNNEncoder.forward:
    #   x: (batch, seq, in_size), lengths: (batch,) -> out: (batch, out_size)
    batch, seq, in_size, hidden_size, out_size = 2, 8, 16, 32, 32

    key = jax.random.PRNGKey(0)
    k_x, k_p = jax.random.split(key)
    x = jax.random.normal(k_x, (batch, seq, in_size), jnp.float32)
    lengths = jnp.array([8, 5], jnp.int32)
    params = init_params(k_p, in_size, hidden_size, out_size)

    # time_chunk=4 -> time grid of 2 steps so the streamed / persistent-state
    # path (init, chunked recurrence, finalize) is exercised across grid steps.
    y = rnn_encoder_forward(x, lengths, params,
                            hidden_size=hidden_size, out_size=out_size,
                            time_chunk=4, batch_block=16)
    y = jax.block_until_ready(y)

    y_ref = reference_forward(x, lengths, params)
    assert y.shape == (batch, out_size)
    # Tolerance loosened vs pure-f32 because matmul operands are bf16
    # (accumulation stays f32); observed error is ~1e-3.
    assert jnp.allclose(y, y_ref, atol=2e-2, rtol=2e-2), "mismatch vs reference"

    print("KERNEL_OK")
</pallas_src>

<mosaic_0001>
module attributes {stable_mosaic.version = 11 : i64} {
  func.func @rnn_encoder_kernel(%arg0: i32, %arg1: i32, %arg2: memref<1xi32, #tpu.memory_space<smem>>, %arg3: memref<4x16x512xbf16, #tpu.memory_space<vmem>>, %arg4: memref<16x1xi32, #tpu.memory_space<vmem>>, %arg5: memref<128x512xbf16, #tpu.memory_space<vmem>>, %arg6: memref<128x128xbf16, #tpu.memory_space<vmem>>, %arg7: memref<1x128xf32, #tpu.memory_space<vmem>>, %arg8: memref<16x128xf32, #tpu.memory_space<vmem>>, %arg9: memref<16x128xbf16, #tpu.memory_space<vmem>>, %arg10: memref<16x128xf32, #tpu.memory_space<vmem>>) attributes {dimension_semantics = [#tpu.dimension_semantics<parallel>, #tpu.dimension_semantics<arbitrary>], iteration_bounds = array<i64: 1, 2>, scalar_prefetch = 1 : i64, scratch_operands = 2 : i64, tpu.core_type = #tpu.core_type<tc>, window_params = [{transform_indices = @transform_0, window_bounds = array<i64: 4, 16, 512>}, {transform_indices = @transform_1, window_bounds = array<i64: 16, 1>}, {pipeline_mode = #tpu.pipeline_mode<synchronous>, transform_indices = @transform_2, window_bounds = array<i64: 128, 512>}, {pipeline_mode = #tpu.pipeline_mode<synchronous>, transform_indices = @transform_3, window_bounds = array<i64: 128, 128>}, {pipeline_mode = #tpu.pipeline_mode<synchronous>, transform_indices = @transform_4, window_bounds = array<i64: 1, 128>}, {transform_indices = @transform_5, window_bounds = array<i64: 16, 128>}]} {
    %c4_i32 = arith.constant 4 : i32
    %0 = arith.muli %arg1, %c4_i32 : i32
    %c0_i32 = arith.constant 0 : i32
    %1 = arith.cmpi eq, %arg1, %c0_i32 : i32
    %2 = arith.extui %1 : i1 to i32
    %c0_i32_0 = arith.constant 0 : i32
    %3 = arith.cmpi ne, %2, %c0_i32_0 : i32
    scf.if %3 {
      %cst = arith.constant 0.000000e+00 : bf16
      %11 = vector.broadcast %cst : bf16 to vector<16x128xbf16>
      %c0_3 = arith.constant 0 : index
      %c0_4 = arith.constant 0 : index
      %12 = vector.load %arg9[%c0_3, %c0_4] : memref<16x128xbf16, #tpu.memory_space<vmem>>, vector<16x128xbf16>
      tpu.vector_store %arg9[%c0_3, %c0_4], %11 {strides = array<i32>} : memref<16x128xbf16, #tpu.memory_space<vmem>>, vector<16x128xbf16>,
      %cst_5 = arith.constant 0.000000e+00 : f32
      %13 = vector.broadcast %cst_5 : f32 to vector<16x128xf32>
      %c0_6 = arith.constant 0 : index
      %c0_7 = arith.constant 0 : index
      %14 = vector.load %arg10[%c0_6, %c0_7] : memref<16x128xf32, #tpu.memory_space<vmem>>, vector<16x128xf32>
      tpu.vector_store %arg10[%c0_6, %c0_7], %13 {strides = array<i32>} : memref<16x128xf32, #tpu.memory_space<vmem>>, vector<16x128xf32>,
    } else {
    }
    %c0 = arith.constant 0 : index
    %4 = memref.load %arg2[%c0] : memref<1xi32, #tpu.memory_space<smem>>
    %5 = arith.cmpi slt, %0, %4 : i32
    %6 = arith.extui %5 : i1 to i32
    %c0_i32_1 = arith.constant 0 : i32
    %7 = arith.cmpi ne, %6, %c0_i32_1 : i32
    scf.if %7 {
      %c0_3 = arith.constant 0 : index
      %c0_4 = arith.constant 0 : index
      %11 = vector.load %arg4[%c0_3, %c0_4] : memref<16x1xi32, #tpu.memory_space<vmem>>, vector<16x1xi32>
      %c0_5 = arith.constant 0 : index
      %c0_6 = arith.constant 0 : index
      %12 = vector.load %arg5[%c0_5, %c0_6] : memref<128x512xbf16, #tpu.memory_space<vmem>>, vector<128x512xbf16>
      %c0_7 = arith.constant 0 : index
      %c0_8 = arith.constant 0 : index
      %13 = vector.load %arg9[%c0_7, %c0_8] : memref<16x128xbf16, #tpu.memory_space<vmem>>, vector<16x128xbf16>
      %c0_9 = arith.constant 0 : index
      %c0_10 = arith.constant 0 : index
      %14 = vector.load %arg10[%c0_9, %c0_10] : memref<16x128xf32, #tpu.memory_space<vmem>>, vector<16x128xf32>
      %c0_i32_11 = arith.constant 0 : i32
      %15 = arith.index_cast %c0_i32_11 : i32 to index
      %c0_12 = arith.constant 0 : index
      %c0_13 = arith.constant 0 : index
      %16 = vector.load %arg3[%15, %c0_12, %c0_13] : memref<4x16x512xbf16, #tpu.memory_space<vmem>>, vector<1x16x512xbf16>
      %17 = vector.shape_cast %16 : vector<1x16x512xbf16> to vector<16x512xbf16>
      %18 = arith.extf %17 : vector<16x512xbf16> to vector<16x512xf32>
      %cst = arith.constant dense<0.000000e+00> : vector<16x512xf32>
      %19 = tpu.matmul %13, %12, %cst {dimension_numbers = #tpu.dot_dimension_numbers<[1], [0], [0], [1], [0, 0, 1, 1], [], []>} : vector<16x128xbf16>, vector<128x512xbf16>, vector<16x512xf32> -> vector<16x512xf32>
      %20 = arith.addf %18, %19 : vector<16x512xf32>
      %21 = vector.extract_strided_slice %20 {offsets = [0, 0], sizes = [16, 128], strides = [1, 1]} : vector<16x512xf32> to vector<16x128xf32>
      %22 = arith.negf %21 : vector<16x128xf32>
      %23 = math.exp %22 : vector<16x128xf32>
      %cst_14 = arith.constant 1.000000e+00 : f32
      %24 = vector.broadcast %cst_14 : f32 to vector<16x128xf32>
      %25 = arith.addf %24, %23 : vector<16x128xf32>
      %26 = arith.divf %24, %25 : vector<16x128xf32>
      %27 = vector.extract_strided_slice %20 {offsets = [0, 128], sizes = [16, 128], strides = [1, 1]} : vector<16x512xf32> to vector<16x128xf32>
      %28 = arith.negf %27 : vector<16x128xf32>
      %29 = math.exp %28 : vector<16x128xf32>
      %cst_15 = arith.constant 1.000000e+00 : f32
      %30 = vector.broadcast %cst_15 : f32 to vector<16x128xf32>
      %31 = arith.addf %30, %29 : vector<16x128xf32>
      %32 = arith.divf %30, %31 : vector<16x128xf32>
      %33 = vector.extract_strided_slice %20 {offsets = [0, 256], sizes = [16, 128], strides = [1, 1]} : vector<16x512xf32> to vector<16x128xf32>
      %34 = math.tanh %33 : vector<16x128xf32>
      %35 = vector.extract_strided_slice %20 {offsets = [0, 384], sizes = [16, 128], strides = [1, 1]} : vector<16x512xf32> to vector<16x128xf32>
      %36 = arith.negf %35 : vector<16x128xf32>
      %37 = math.exp %36 : vector<16x128xf32>
      %cst_16 = arith.constant 1.000000e+00 : f32
      %38 = vector.broadcast %cst_16 : f32 to vector<16x128xf32>
      %39 = arith.addf %38, %37 : vector<16x128xf32>
      %40 = arith.divf %38, %39 : vector<16x128xf32>
      %41 = arith.mulf %32, %14 : vector<16x128xf32>
      %42 = arith.mulf %26, %34 : vector<16x128xf32>
      %43 = arith.addf %41, %42 : vector<16x128xf32>
      %44 = math.tanh %43 : vector<16x128xf32>
      %45 = arith.mulf %40, %44 : vector<16x128xf32>
      %46 = arith.addi %0, %c0_i32_11 : i32
      %47 = vector.broadcast %46 : i32 to vector<16x1xi32>
      %48 = arith.cmpi slt, %47, %11 : vector<16x1xi32>
      %49 = arith.truncf %45 : vector<16x128xf32> to vector<16x128xbf16>
      %50 = vector.shape_cast %48 : vector<16x1xi1> to vector<16x1xi1>
      %51 = vector.broadcast %50 : vector<16x1xi1> to vector<16x128xi1>
      %52 = arith.select %51, %49, %13 : vector<16x128xi1>, vector<16x128xbf16>
      %53 = vector.shape_cast %48 : vector<16x1xi1> to vector<16x1xi1>
      %54 = vector.broadcast %53 : vector<16x1xi1> to vector<16x128xi1>
      %55 = arith.select %54, %43, %14 : vector<16x128xi1>, vector<16x128xf32>
      %c1_i32_17 = arith.constant 1 : i32
      %56 = arith.index_cast %c1_i32_17 : i32 to index
      %c0_18 = arith.constant 0 : index
      %c0_19 = arith.constant 0 : index
      %57 = vector.load %arg3[%56, %c0_18, %c0_19] : memref<4x16x512xbf16, #tpu.memory_space<vmem>>, vector<1x16x512xbf16>
      %58 = vector.shape_cast %57 : vector<1x16x512xbf16> to vector<16x512xbf16>
      %59 = arith.extf %58 : vector<16x512xbf16> to vector<16x512xf32>
      %cst_20 = arith.constant dense<0.000000e+00> : vector<16x512xf32>
      %60 = tpu.matmul %52, %12, %cst_20 {dimension_numbers = #tpu.dot_dimension_numbers<[1], [0], [0], [1], [0, 0, 1, 1], [], []>} : vector<16x128xbf16>, vector<128x512xbf16>, vector<16x512xf32> -> vector<16x512xf32>
      %61 = arith.addf %59, %60 : vector<16x512xf32>
      %62 = vector.extract_strided_slice %61 {offsets = [0, 0], sizes = [16, 128], strides = [1, 1]} : vector<16x512xf32> to vector<16x128xf32>
      %63 = arith.negf %62 : vector<16x128xf32>
      %64 = math.exp %63 : vector<16x128xf32>
      %cst_21 = arith.constant 1.000000e+00 : f32
      %65 = vector.broadcast %cst_21 : f32 to vector<16x128xf32>
      %66 = arith.addf %65, %64 : vector<16x128xf32>
      %67 = arith.divf %65, %66 : vector<16x128xf32>
      %68 = vector.extract_strided_slice %61 {offsets = [0, 128], sizes = [16, 128], strides = [1, 1]} : vector<16x512xf32> to vector<16x128xf32>
      %69 = arith.negf %68 : vector<16x128xf32>
      %70 = math.exp %69 : vector<16x128xf32>
      %cst_22 = arith.constant 1.000000e+00 : f32
      %71 = vector.broadcast %cst_22 : f32 to vector<16x128xf32>
      %72 = arith.addf %71, %70 : vector<16x128xf32>
      %73 = arith.divf %71, %72 : vector<16x128xf32>
      %74 = vector.extract_strided_slice %61 {offsets = [0, 256], sizes = [16, 128], strides = [1, 1]} : vector<16x512xf32> to vector<16x128xf32>
      %75 = math.tanh %74 : vector<16x128xf32>
      %76 = vector.extract_strided_slice %61 {offsets = [0, 384], sizes = [16, 128], strides = [1, 1]} : vector<16x512xf32> to vector<16x128xf32>
      %77 = arith.negf %76 : vector<16x128xf32>
      %78 = math.exp %77 : vector<16x128xf32>
      %cst_23 = arith.constant 1.000000e+00 : f32
      %79 = vector.broadcast %cst_23 : f32 to vector<16x128xf32>
      %80 = arith.addf %79, %78 : vector<16x128xf32>
      %81 = arith.divf %79, %80 : vector<16x128xf32>
      %82 = arith.mulf %73, %55 : vector<16x128xf32>
      %83 = arith.mulf %67, %75 : vector<16x128xf32>
      %84 = arith.addf %82, %83 : vector<16x128xf32>
      %85 = math.tanh %84 : vector<16x128xf32>
      %86 = arith.mulf %81, %85 : vector<16x128xf32>
      %87 = arith.addi %0, %c1_i32_17 : i32
      %88 = vector.broadcast %87 : i32 to vector<16x1xi32>
      %89 = arith.cmpi slt, %88, %11 : vector<16x1xi32>
      %90 = arith.truncf %86 : vector<16x128xf32> to vector<16x128xbf16>
      %91 = vector.shape_cast %89 : vector<16x1xi1> to vector<16x1xi1>
      %92 = vector.broadcast %91 : vector<16x1xi1> to vector<16x128xi1>
      %93 = arith.select %92, %90, %52 : vector<16x128xi1>, vector<16x128xbf16>
      %94 = vector.shape_cast %89 : vector<16x1xi1> to vector<16x1xi1>
      %95 = vector.broadcast %94 : vector<16x1xi1> to vector<16x128xi1>
      %96 = arith.select %95, %84, %55 : vector<16x128xi1>, vector<16x128xf32>
      %c2_i32 = arith.constant 2 : i32
      %97 = arith.index_cast %c2_i32 : i32 to index
      %c0_24 = arith.constant 0 : index
      %c0_25 = arith.constant 0 : index
      %98 = vector.load %arg3[%97, %c0_24, %c0_25] : memref<4x16x512xbf16, #tpu.memory_space<vmem>>, vector<1x16x512xbf16>
      %99 = vector.shape_cast %98 : vector<1x16x512xbf16> to vector<16x512xbf16>
      %100 = arith.extf %99 : vector<16x512xbf16> to vector<16x512xf32>
      %cst_26 = arith.constant dense<0.000000e+00> : vector<16x512xf32>
      %101 = tpu.matmul %93, %12, %cst_26 {dimension_numbers = #tpu.dot_dimension_numbers<[1], [0], [0], [1], [0, 0, 1, 1], [], []>} : vector<16x128xbf16>, vector<128x512xbf16>, vector<16x512xf32> -> vector<16x512xf32>
      %102 = arith.addf %100, %101 : vector<16x512xf32>
      %103 = vector.extract_strided_slice %102 {offsets = [0, 0], sizes = [16, 128], strides = [1, 1]} : vector<16x512xf32> to vector<16x128xf32>
      %104 = arith.negf %103 : vector<16x128xf32>
      %105 = math.exp %104 : vector<16x128xf32>
      %cst_27 = arith.constant 1.000000e+00 : f32
      %106 = vector.broadcast %cst_27 : f32 to vector<16x128xf32>
      %107 = arith.addf %106, %105 : vector<16x128xf32>
      %108 = arith.divf %106, %107 : vector<16x128xf32>
      %109 = vector.extract_strided_slice %102 {offsets = [0, 128], sizes = [16, 128], strides = [1, 1]} : vector<16x512xf32> to vector<16x128xf32>
      %110 = arith.negf %109 : vector<16x128xf32>
      %111 = math.exp %110 : vector<16x128xf32>
      %cst_28 = arith.constant 1.000000e+00 : f32
      %112 = vector.broadcast %cst_28 : f32 to vector<16x128xf32>
      %113 = arith.addf %112, %111 : vector<16x128xf32>
      %114 = arith.divf %112, %113 : vector<16x128xf32>
      %115 = vector.extract_strided_slice %102 {offsets = [0, 256], sizes = [16, 128], strides = [1, 1]} : vector<16x512xf32> to vector<16x128xf32>
      %116 = math.tanh %115 : vector<16x128xf32>
      %117 = vector.extract_strided_slice %102 {offsets = [0, 384], sizes = [16, 128], strides = [1, 1]} : vector<16x512xf32> to vector<16x128xf32>
      %118 = arith.negf %117 : vector<16x128xf32>
      %119 = math.exp %118 : vector<16x128xf32>
      %cst_29 = arith.constant 1.000000e+00 : f32
      %120 = vector.broadcast %cst_29 : f32 to vector<16x128xf32>
      %121 = arith.addf %120, %119 : vector<16x128xf32>
      %122 = arith.divf %120, %121 : vector<16x128xf32>
      %123 = arith.mulf %114, %96 : vector<16x128xf32>
      %124 = arith.mulf %108, %116 : vector<16x128xf32>
      %125 = arith.addf %123, %124 : vector<16x128xf32>
      %126 = math.tanh %125 : vector<16x128xf32>
      %127 = arith.mulf %122, %126 : vector<16x128xf32>
      %128 = arith.addi %0, %c2_i32 : i32
      %129 = vector.broadcast %128 : i32 to vector<16x1xi32>
      %130 = arith.cmpi slt, %129, %11 : vector<16x1xi32>
      %131 = arith.truncf %127 : vector<16x128xf32> to vector<16x128xbf16>
      %132 = vector.shape_cast %130 : vector<16x1xi1> to vector<16x1xi1>
      %133 = vector.broadcast %132 : vector<16x1xi1> to vector<16x128xi1>
      %134 = arith.select %133, %131, %93 : vector<16x128xi1>, vector<16x128xbf16>
      %135 = vector.shape_cast %130 : vector<16x1xi1> to vector<16x1xi1>
      %136 = vector.broadcast %135 : vector<16x1xi1> to vector<16x128xi1>
      %137 = arith.select %136, %125, %96 : vector<16x128xi1>, vector<16x128xf32>
      %c3_i32 = arith.constant 3 : i32
      %138 = arith.index_cast %c3_i32 : i32 to index
      %c0_30 = arith.constant 0 : index
      %c0_31 = arith.constant 0 : index
      %139 = vector.load %arg3[%138, %c0_30, %c0_31] : memref<4x16x512xbf16, #tpu.memory_space<vmem>>, vector<1x16x512xbf16>
      %140 = vector.shape_cast %139 : vector<1x16x512xbf16> to vector<16x512xbf16>
      %141 = arith.extf %140 : vector<16x512xbf16> to vector<16x512xf32>
      %cst_32 = arith.constant dense<0.000000e+00> : vector<16x512xf32>
      %142 = tpu.matmul %134, %12, %cst_32 {dimension_numbers = #tpu.dot_dimension_numbers<[1], [0], [0], [1], [0, 0, 1, 1], [], []>} : vector<16x128xbf16>, vector<128x512xbf16>, vector<16x512xf32> -> vector<16x512xf32>
      %143 = arith.addf %141, %142 : vector<16x512xf32>
      %144 = vector.extract_strided_slice %143 {offsets = [0, 0], sizes = [16, 128], strides = [1, 1]} : vector<16x512xf32> to vector<16x128xf32>
      %145 = arith.negf %144 : vector<16x128xf32>
      %146 = math.exp %145 : vector<16x128xf32>
      %cst_33 = arith.constant 1.000000e+00 : f32
      %147 = vector.broadcast %cst_33 : f32 to vector<16x128xf32>
      %148 = arith.addf %147, %146 : vector<16x128xf32>
      %149 = arith.divf %147, %148 : vector<16x128xf32>
      %150 = vector.extract_strided_slice %143 {offsets = [0, 128], sizes = [16, 128], strides = [1, 1]} : vector<16x512xf32> to vector<16x128xf32>
      %151 = arith.negf %150 : vector<16x128xf32>
      %152 = math.exp %151 : vector<16x128xf32>
      %cst_34 = arith.constant 1.000000e+00 : f32
      %153 = vector.broadcast %cst_34 : f32 to vector<16x128xf32>
      %154 = arith.addf %153, %152 : vector<16x128xf32>
      %155 = arith.divf %153, %154 : vector<16x128xf32>
      %156 = vector.extract_strided_slice %143 {offsets = [0, 256], sizes = [16, 128], strides = [1, 1]} : vector<16x512xf32> to vector<16x128xf32>
      %157 = math.tanh %156 : vector<16x128xf32>
      %158 = vector.extract_strided_slice %143 {offsets = [0, 384], sizes = [16, 128], strides = [1, 1]} : vector<16x512xf32> to vector<16x128xf32>
      %159 = arith.negf %158 : vector<16x128xf32>
      %160 = math.exp %159 : vector<16x128xf32>
      %cst_35 = arith.constant 1.000000e+00 : f32
      %161 = vector.broadcast %cst_35 : f32 to vector<16x128xf32>
      %162 = arith.addf %161, %160 : vector<16x128xf32>
      %163 = arith.divf %161, %162 : vector<16x128xf32>
      %164 = arith.mulf %155, %137 : vector<16x128xf32>
      %165 = arith.mulf %149, %157 : vector<16x128xf32>
      %166 = arith.addf %164, %165 : vector<16x128xf32>
      %167 = math.tanh %166 : vector<16x128xf32>
      %168 = arith.mulf %163, %167 : vector<16x128xf32>
      %169 = arith.addi %0, %c3_i32 : i32
      %170 = vector.broadcast %169 : i32 to vector<16x1xi32>
      %171 = arith.cmpi slt, %170, %11 : vector<16x1xi32>
      %172 = arith.truncf %168 : vector<16x128xf32> to vector<16x128xbf16>
      %173 = vector.shape_cast %171 : vector<16x1xi1> to vector<16x1xi1>
      %174 = vector.broadcast %173 : vector<16x1xi1> to vector<16x128xi1>
      %175 = arith.select %174, %172, %134 : vector<16x128xi1>, vector<16x128xbf16>
      %176 = vector.shape_cast %171 : vector<16x1xi1> to vector<16x1xi1>
      %177 = vector.broadcast %176 : vector<16x1xi1> to vector<16x128xi1>
      %178 = arith.select %177, %166, %137 : vector<16x128xi1>, vector<16x128xf32>
      %c4_i32_36 = arith.constant 4 : i32
      %c0_37 = arith.constant 0 : index
      %c0_38 = arith.constant 0 : index
      %179 = vector.load %arg9[%c0_37, %c0_38] : memref<16x128xbf16, #tpu.memory_space<vmem>>, vector<16x128xbf16>
      tpu.vector_store %arg9[%c0_37, %c0_38], %175 {strides = array<i32>} : memref<16x128xbf16, #tpu.memory_space<vmem>>, vector<16x128xbf16>,
      %c0_39 = arith.constant 0 : index
      %c0_40 = arith.constant 0 : index
      %180 = vector.load %arg10[%c0_39, %c0_40] : memref<16x128xf32, #tpu.memory_space<vmem>>, vector<16x128xf32>
      tpu.vector_store %arg10[%c0_39, %c0_40], %178 {strides = array<i32>} : memref<16x128xf32, #tpu.memory_space<vmem>>, vector<16x128xf32>,
    } else {
    }
    %c1_i32 = arith.constant 1 : i32
    %8 = arith.cmpi eq, %arg1, %c1_i32 : i32
    %9 = arith.extui %8 : i1 to i32
    %c0_i32_2 = arith.constant 0 : i32
    %10 = arith.cmpi ne, %9, %c0_i32_2 : i32
    scf.if %10 {
      %c0_3 = arith.constant 0 : index
      %c0_4 = arith.constant 0 : index
      %11 = vector.load %arg9[%c0_3, %c0_4] : memref<16x128xbf16, #tpu.memory_space<vmem>>, vector<16x128xbf16>
      %c0_5 = arith.constant 0 : index
      %c0_6 = arith.constant 0 : index
      %12 = vector.load %arg6[%c0_5, %c0_6] : memref<128x128xbf16, #tpu.memory_space<vmem>>, vector<128x128xbf16>
      %cst = arith.constant dense<0.000000e+00> : vector<16x128xf32>
      %13 = tpu.matmul %11, %12, %cst {dimension_numbers = #tpu.dot_dimension_numbers<[1], [0], [0], [1], [0, 0, 1, 1], [], []>} : vector<16x128xbf16>, vector<128x128xbf16>, vector<16x128xf32> -> vector<16x128xf32>
      %c0_7 = arith.constant 0 : index
      %c0_8 = arith.constant 0 : index
      %14 = vector.load %arg7[%c0_7, %c0_8] : memref<1x128xf32, #tpu.memory_space<vmem>>, vector<1x128xf32>
      %15 = vector.broadcast %14 : vector<1x128xf32> to vector<16x128xf32>
      %16 = arith.addf %13, %15 : vector<16x128xf32>
      %c0_9 = arith.constant 0 : index
      %c0_10 = arith.constant 0 : index
      %17 = vector.load %arg8[%c0_9, %c0_10] : memref<16x128xf32, #tpu.memory_space<vmem>>, vector<16x128xf32>
      tpu.vector_store %arg8[%c0_9, %c0_10], %16 {strides = array<i32>} : memref<16x128xf32, #tpu.memory_space<vmem>>, vector<16x128xf32>,
    } else {
    }
    return
  }
  func.func @transform_0(%arg0: i32, %arg1: i32, %arg2: memref<1xi32, #tpu.memory_space<smem>>) -> (i32, i32, i32) {
    %c0_i32 = arith.constant 0 : i32
    %c0_i32_0 = arith.constant 0 : i32
    return %arg1, %arg0, %c0_i32 : i32, i32, i32
  }
  func.func @transform_1(%arg0: i32, %arg1: i32, %arg2: memref<1xi32, #tpu.memory_space<smem>>) -> (i32, i32) {
    %c0_i32 = arith.constant 0 : i32
    %c0_i32_0 = arith.constant 0 : i32
    return %arg0, %c0_i32 : i32, i32
  }
  func.func @transform_2(%arg0: i32, %arg1: i32, %arg2: memref<1xi32, #tpu.memory_space<smem>>) -> (i32, i32) {
    %c0_i32 = arith.constant 0 : i32
    %c0_i32_0 = arith.constant 0 : i32
    %c0_i32_1 = arith.constant 0 : i32
    return %c0_i32, %c0_i32_0 : i32, i32
  }
  func.func @transform_3(%arg0: i32, %arg1: i32, %arg2: memref<1xi32, #tpu.memory_space<smem>>) -> (i32, i32) {
    %c0_i32 = arith.constant 0 : i32
    %c0_i32_0 = arith.constant 0 : i32
    %c0_i32_1 = arith.constant 0 : i32
    return %c0_i32, %c0_i32_0 : i32, i32
  }
  func.func @transform_4(%arg0: i32, %arg1: i32, %arg2: memref<1xi32, #tpu.memory_space<smem>>) -> (i32, i32) {
    %c0_i32 = arith.constant 0 : i32
    %c0_i32_0 = arith.constant 0 : i32
    %c0_i32_1 = arith.constant 0 : i32
    return %c0_i32, %c0_i32_0 : i32, i32
  }
  func.func @transform_5(%arg0: i32, %arg1: i32, %arg2: memref<1xi32, #tpu.memory_space<smem>>) -> (i32, i32) {
    %c0_i32 = arith.constant 0 : i32
    %c0_i32_0 = arith.constant 0 : i32
    return %arg0, %c0_i32 : i32, i32
  }
}

</mosaic_0001>

<bundles_post_ra>
// kernel: rnn_encoder_forward.1
= control target key start
LH: loop header
LB: loop body
LE: loop exit
PB: predicated region body
PF: predicated region fallthrough
CT: control target
= control target key end

     0   :  { %s2094_s23 = smov 0   ;;  %s2096_s24 = smov 0   ;;  %s2880_s0 = inlined_call_operand.<no memory space> [shape: s32[1], index: 0, kind: input, shape index: {}]   ;;  %s2881_s1 = inlined_call_operand.vmem [shape: bf16[8,16,512], index: 1, kind: input, shape index: {}]   ;;  %s2882_s2 = inlined_call_operand.vmem [shape: s32[16,1], index: 2, kind: input, shape index: {}]   ;;  %s2883_s3 = inlined_call_operand.vmem [shape: bf16[128,512], index: 3, kind: input, shape index: {}]   ;;  %s2884_s4 = inlined_call_operand.vmem [shape: bf16[128,128], index: 4, kind: input, shape index: {}]   ;;  %s2885_s5 = inlined_call_operand.vmem [shape: f32[1,128], index: 5, kind: input, shape index: {}]   ;;  %s2886_s6 = inlined_call_operand.vmem [shape: f32[16,128], index: 6, kind: output, shape index: {}]  }
   0x1   :  { %11 = sst [smem:[#allocation5]] %s2880_s0  ;;  %s2098_s25 = smov 0  }
   0x2 LB: > { %s26_s0 = sadd.s32 1, %s2047_s24  ;;  %p1611_p0 = scmp.ge.s32.totalorder %s2051_s25, 1  ;;  %s2051_s25 = sphi %s2098_s25, %s17_s25   ;;  %s2047_s24 = sphi %s2096_s24, %s2907_s24   ;;  %s2043_s23 = sphi %s2094_s23, %s2906_s23  }
   0x3   : > { %p27_p1 = scmp.ge.s32.totalorder %s26_s0, 2  ;;  %p222_p2 = scmp.lt.s32.totalorder %s2051_s25, 3 }
   0x5   : > { %s2909_s0 = smov (%p27_p1, %s26_s0), 0  ;;  %p223_p3 = pnand %p1611_p0, %p222_p2 }
   0x6   : > { %s2115_s26 = sshll.u32 (!%p223_p3), %s2043_s23, 2  ;;  %p1616_p5 = scmp.ne.s32.totalorder (!%p223_p3), %s2043_s23, 0 }
   0x7   : > { %226 = sbr.rel (%p223_p3) target bundleno = 993 (0x3e1), region = 40  ;;  %p263_p4 = scmp.lt.s32.totalorder (!%p223_p3), %s2115_s26, 7 }
   0xc   : > { %s264_s27 = scalar_select %p263_p4, %s2115_s26, 7 }
   0xd   : > { %291 = sbr.rel (%p1616_p5) target bundleno = 23 (0x17), region = 44 }
   0xe   : > { %s1827_s28 = sshll.u32 %s264_s27, 5 }
   0xf   : > { %s2122_s7 = scalar_lea.vmem %s2881_s1, %s1827_s28 }
  0x12   : > { %v2053_v0 = vmov 0   ;;  %v2054_v1 = vmov 0.0  }
  0x13   : > { %292 = vst [vmem:[#allocation2] sm:$0xf] %v2053_v0 }
  0x14   : > { %293 = vst [vmem:[#allocation2 + $0x4] sm:$0xf] %v2053_v0 }
  0x15   : > { %294 = vst [vmem:[#allocation3] sm:$0xff] %v2054_v1 }
  0x16   : > { %295 = vst [vmem:[#allocation3 + $0x8] sm:$0xff] %v2054_v1 }
  0x17 PF: > { %s296_s8 = sld [smem:[#allocation5]] }
  0x1d   : > { %p1617_p6 = scmp.ge.s32.totalorder %s2115_s26, %s296_s8 }
  0x1f   : > { %300 = sbr.rel (%p1617_p6) target bundleno = 817 (0x331), region = 48 }
  0x24   : > { %v1736_v2 = vld [vmem:[%s2883_s3 + $0xe0] sm:$0xf]  ;;  %v1858_v3 = vld [vmem:[%s2883_s3 + $0xec] sm:$0xf0]  ;;  %v1856_v4 = vld [vmem:[%s2883_s3 + $0xe4] sm:$0xf] }
  0x25   : > { %v2135_v5 = vor.u32 %v1858_v3, %v1736_v2  ;;  %v1738_v6 = vld [vmem:[%s2883_s3 + $0xf0] sm:$0xf0]  ;;  %v1857_v7 = vld [vmem:[%s2883_s3 + $0xec] sm:$0xf]  ;;  %v1746_v8 = vld [vmem:[%s2883_s3 + $0xf8] sm:$0xf0] }
  0x26   : > { %v2146_v9 = vor.u32 %v1856_v4, %v1738_v6  ;;  %v2148_v10 = vor.u32 %v1857_v7, %v1746_v8  ;;  %v1720_v11 = vld [vmem:[%s2883_s3 + $0xc0] sm:$0xf]  ;;  %v1854_v12 = vld [vmem:[%s2883_s3 + $0xcc] sm:$0xf0]  ;;  %v1852_v13 = vld [vmem:[%s2883_s3 + $0xc4] sm:$0xf] }
  0x27   : > { %517 = vmatpush.bf16.msra.mxu0 %v2135_v5  ;;  %v2160_v14 = vor.u32 %v1854_v12, %v1720_v11  ;;  %v1722_v15 = vld [vmem:[%s2883_s3 + $0xd0] sm:$0xf0]  ;;  %v1853_v16 = vld [vmem:[%s2883_s3 + $0xcc] sm:$0xf]  ;;  %v1730_v17 = vld [vmem:[%s2883_s3 + $0xd8] sm:$0xf0]  ;;  %v707_v12 = vstv %s2115_s26 }
  0x28   : > { %531 = vmatpush.bf16.msra.mxu1 %v2146_v9  ;;  %559 = vmatpush.bf16.msra.mxu3 %v2148_v10  ;;  %v2173_v18 = vor.u32 %v1852_v13, %v1722_v15  ;;  %v2175_v19 = vor.u32 %v1853_v16, %v1730_v17  ;;  %v1744_v20 = vld [vmem:[%s2883_s3 + $0xe8] sm:$0xf]  ;;  %v1859_v21 = vld [vmem:[%s2883_s3 + $0xf4] sm:$0xf0]  ;;  %v1704_v22 = vld [vmem:[%s2883_s3 + $0xa0] sm:$0xf] }
  0x29   : > { %v2186_v23 = vor.u32 %v1859_v21, %v1744_v20  ;;  %v1850_v24 = vld [vmem:[%s2883_s3 + $0xac] sm:$0xf0]  ;;  %v1848_v25 = vld [vmem:[%s2883_s3 + $0xa4] sm:$0xf]  ;;  %v1706_v26 = vld [vmem:[%s2883_s3 + $0xb0] sm:$0xf0] }
  0x2a   : > { %v1849_v27 = vld [vmem:[%s2883_s3 + $0xac] sm:$0xf]  ;;  %v1714_v28 = vld [vmem:[%s2883_s3 + $0xb8] sm:$0xf0]  ;;  %v1728_v29 = vld [vmem:[%s2883_s3 + $0xc8] sm:$0xf]  ;;  %v2208_v30 = vor.u32 %v1850_v24, %v1704_v22  ;;  %v2221_v34 = vor.u32 %v1848_v25, %v1706_v26 }
  0x2b   : > { %518 = vmatpush.bf16.msra.mxu0 %v2160_v14  ;;  %545 = vmatpush.bf16.msra.mxu2 %v2186_v23  ;;  %v1855_v31 = vld [vmem:[%s2883_s3 + $0xd4] sm:$0xf0]  ;;  %v1688_v32 = vld [vmem:[%s2883_s3 + $0x80] sm:$0xf]  ;;  %v1846_v33 = vld [vmem:[%s2883_s3 + $0x8c] sm:$0xf0]  ;;  %v2223_v35 = vor.u32 %v1849_v27, %v1714_v28 }
  0x2c   : > { %532 = vmatpush.bf16.msra.mxu1 %v2173_v18  ;;  %560 = vmatpush.bf16.msra.mxu3 %v2175_v19  ;;  %v2225_v36 = vor.u32 %v1855_v31, %v1728_v29  ;;  %v1844_v37 = vld [vmem:[%s2883_s3 + $0x84] sm:$0xf]  ;;  %v1690_v38 = vld [vmem:[%s2883_s3 + $0x90] sm:$0xf0]  ;;  %v1845_v39 = vld [vmem:[%s2883_s3 + $0x8c] sm:$0xf]  ;;  %v2247_v43 = vor.u32 %v1846_v33, %v1688_v32 }
  0x2d   : > { %v1698_v40 = vld [vmem:[%s2883_s3 + $0x98] sm:$0xf0]  ;;  %v1712_v41 = vld [vmem:[%s2883_s3 + $0xa8] sm:$0xf]  ;;  %v1851_v42 = vld [vmem:[%s2883_s3 + $0xb4] sm:$0xf0]  ;;  %v2259_v47 = vor.u32 %v1844_v37, %v1690_v38 }
  0x2e   : > { %v2249_v44 = vor.u32 %v1851_v42, %v1712_v41  ;;  %v1672_v45 = vld [vmem:[%s2883_s3 + $0x60] sm:$0xf]  ;;  %v1842_v46 = vld [vmem:[%s2883_s3 + $0x6c] sm:$0xf0]  ;;  %v2261_v48 = vor.u32 %v1845_v39, %v1698_v40  ;;  %v1840_v49 = vld [vmem:[%s2883_s3 + $0x64] sm:$0xf] }
  0x2f   : > { %519 = vmatpush.bf16.msra.mxu0 %v2208_v30  ;;  %546 = vmatpush.bf16.msra.mxu2 %v2225_v36  ;;  %v1696_v50 = vld [vmem:[%s2883_s3 + $0x88] sm:$0xf]  ;;  %v1847_v51 = vld [vmem:[%s2883_s3 + $0x94] sm:$0xf0]  ;;  %v1674_v52 = vld [vmem:[%s2883_s3 + $0x70] sm:$0xf0]  ;;  %v2283_v55 = vor.u32 %v1842_v46, %v1672_v45 }
  0x30   : > { %533 = vmatpush.bf16.msra.mxu1 %v2221_v34  ;;  %561 = vmatpush.bf16.msra.mxu3 %v2223_v35  ;;  %v1841_v53 = vld [vmem:[%s2883_s3 + $0x6c] sm:$0xf]  ;;  %v1682_v54 = vld [vmem:[%s2883_s3 + $0x78] sm:$0xf0]  ;;  %v2285_v56 = vor.u32 %v1847_v51, %v1696_v50  ;;  %v1656_v57 = vld [vmem:[%s2883_s3 + $0x40] sm:$0xf]  ;;  %v2295_v59 = vor.u32 %v1840_v49, %v1674_v52 }
  0x31   : > { %v1838_v58 = vld [vmem:[%s2883_s3 + $0x4c] sm:$0xf0]  ;;  %v2297_v60 = vor.u32 %v1841_v53, %v1682_v54  ;;  %v1836_v61 = vld [vmem:[%s2883_s3 + $0x44] sm:$0xf]  ;;  %v1680_v62 = vld [vmem:[%s2883_s3 + $0x68] sm:$0xf] }
  0x32   : > { %v1843_v63 = vld [vmem:[%s2883_s3 + $0x74] sm:$0xf0]  ;;  %v1658_v0 = vld [vmem:[%s2883_s3 + $0x50] sm:$0xf0]  ;;  %v1837_v1 = vld [vmem:[%s2883_s3 + $0x4c] sm:$0xf]  ;;  %v2322_v4 = vor.u32 %v1838_v58, %v1656_v57 }
  0x33   : > { %520 = vmatpush.bf16.msra.mxu0 %v2247_v43  ;;  %547 = vmatpush.bf16.msra.mxu2 %v2249_v44  ;;  %v1666_v2 = vld [vmem:[%s2883_s3 + $0x58] sm:$0xf0]  ;;  %v1640_v3 = vld [vmem:[%s2883_s3 + $0x20] sm:$0xf]  ;;  %v2324_v6 = vor.u32 %v1843_v63, %v1680_v62  ;;  %v1834_v7 = vld [vmem:[%s2883_s3 + $0x2c] sm:$0xf0]  ;;  %v2338_v13 = vor.u32 %v1836_v61, %v1658_v0 }
  0x34   : > { %534 = vmatpush.bf16.msra.mxu1 %v2259_v47  ;;  %562 = vmatpush.bf16.msra.mxu3 %v2261_v48  ;;  %v1832_v8 = vld [vmem:[%s2883_s3 + $0x24] sm:$0xf]  ;;  %v1642_v11 = vld [vmem:[%s2883_s3 + $0x30] sm:$0xf0]  ;;  %v2340_v15 = vor.u32 %v1837_v1, %v1666_v2  ;;  %v1664_v16 = vld [vmem:[%s2883_s3 + $0x48] sm:$0xf]  ;;  %v2368_v26 = vor.u32 %v1834_v7, %v1640_v3 }
  0x35   : > { %v1839_v17 = vld [vmem:[%s2883_s3 + $0x54] sm:$0xf0]  ;;  %v1833_v20 = vld [vmem:[%s2883_s3 + $0x2c] sm:$0xf]  ;;  %v1650_v21 = vld [vmem:[%s2883_s3 + $0x38] sm:$0xf0]  ;;  %v2381_v32 = vor.u32 %v1832_v8, %v1642_v11 }
  0x36   : > { %v2887_v22 = vmov 0   ;;  %v2358_v24 = vld [vmem:[%s2882_s2] sm:$0xff]  ;;  %v2370_v27 = vor.u32 %v1839_v17, %v1664_v16  ;;  %v1830_v28 = vld [vmem:[%s2883_s3 + $0xc] sm:$0xf0]  ;;  %v2383_v33 = vor.u32 %v1833_v20, %v1650_v21  ;;  %v1648_v37 = vld [vmem:[%s2883_s3 + $0x28] sm:$0xf] }
  0x37   : > { %521 = vmatpush.bf16.msra.mxu0 %v2283_v55  ;;  %548 = vmatpush.bf16.msra.mxu2 %v2285_v56  ;;  %v1624_v25 = vld [vmem:[%s2883_s3] sm:$0xf]  ;;  %vm708_vm0 = vcmp.lt.s32.totalorder %v707_v12, %v2358_v24  ;;  %v1828_v29 = vld [vmem:[%s2883_s3 + $0x4] sm:$0xf]  ;;  %v1835_v38 = vld [vmem:[%s2883_s3 + $0x34] sm:$0xf0] }
  0x38   : > { %535 = vmatpush.bf16.msra.mxu1 %v2295_v59  ;;  %563 = vmatpush.bf16.msra.mxu3 %v2297_v60  ;;  %v712_v31 = vsel %vm708_vm0, 1, %v2887_v22  ;;  %v2394_v39 = vld [vmem:[%s2882_s2 + $0x8] sm:$0xff]  ;;  %v1626_v40 = vld [vmem:[%s2883_s3 + $0x10] sm:$0xf0]  ;;  %v1634_v42 = vld [vmem:[%s2883_s3 + $0x18] sm:$0xf0]  ;;  %v2407_v45 = vor.u32 %v1830_v28, %v1624_v25  ;;  %v2409_v46 = vor.u32 %v1835_v38, %v1648_v37 }
  0x39   : > { %1897 = vset.pattern.permute.xlu0 %v2887_v22  ;;  %1898 = vset.pattern.permute.xlu1 %v2887_v22  ;;  %v1829_v41 = vld [vmem:[%s2883_s3 + $0xc] sm:$0xf]  ;;  %vm709_vm1 = vcmp.lt.s32.totalorder %v707_v12, %v2394_v39  ;;  %v2414_v49 = vor.u32 %v1828_v29, %v1626_v40  ;;  %v1632_v51 = vld [vmem:[%s2883_s3 + $0x8] sm:$0xf]  ;;  %v1831_v52 = vld [vmem:[%s2883_s3 + $0x14] sm:$0xf0] }
  0x3a   : > { %1899 = vset.pattern.permute.xlu2 %v2887_v22  ;;  %715 = vperm.xlu0 %1897, %v712_v31   ;;  %v2416_v50 = vor.u32 %v1829_v41, %v1634_v42  ;;  %s1399_s8 = sadd.s32 3, %s2115_s26  ;;  %v1860_v53 = vld [vmem:[#allocation2] sm:$0xff]  ;;  %v713_v54 = vsel %vm709_vm1, 1, %v2887_v22  ;;  %v2430_v57 = vor.u32 %v1831_v52, %v1632_v51  ;;  %v340_v7 = vld [vmem:[%s2122_s7 + $0x8] sm:$0xff]  ;;  %v341_v11 = vld [vmem:[%s2122_s7 + $0x10] sm:$0xff]  ;;  %s937_s9 = sadd.s32 1, %s2115_s26 }
  0x3b   : > { %522 = vmatpush.bf16.msra.mxu0 %v2322_v4  ;;  %549 = vmatpush.bf16.msra.mxu2 %v2324_v6  ;;  %v2432_v58 = vstv %s1399_s8  ;;  %v339_v62 = vld [vmem:[%s2122_s7] sm:$0xff]  ;;  %v346_v17 = vunpack.c.h.bf16 %v340_v7  ;;  %v347_v20 = vunpack.c.l.bf16 %v341_v11  ;;  %v348_v21 = vunpack.c.h.bf16 %v341_v11  ;;  %v2506_v38 = vld [vmem:[%s2122_s7 + $0x18] sm:$0xff]  ;;  %s1168_s10 = sadd.s32 2, %s2115_s26 }
  0x3c   : > { %536 = vmatpush.bf16.msra.mxu1 %v2338_v13  ;;  %564 = vmatpush.bf16.msra.mxu3 %v2340_v15  ;;  %2891 = vst [vmem:[#allocation6_spill] sm:$0xff] %v2416_v50  ;;  %vm1401_vm2 = vcmp.lt.s32.totalorder %v2432_v58, %v2358_v24  ;;  %v343_v63 = vunpack.c.l.bf16 %v339_v62  ;;  %v344_v0 = vunpack.c.h.bf16 %v339_v62  ;;  %v345_v52 = vunpack.c.l.bf16 %v340_v7 }
  0x3d   : > { %2892 = vst [vmem:[#allocation7_spill] sm:$0xff] %v2430_v57  ;;  %v1405_v61 = vsel %vm1401_vm2, 1, %v2887_v22  ;;  %v350_v62 = vunpack.c.h.bf16 %v2506_v38 }
  0x3f   : > { %523 = vmatpush.bf16.msra.mxu0 %v2368_v26  ;;  %550 = vmatpush.bf16.msra.mxu2 %v2370_v27 }
  0x40   : > { %537 = vmatpush.bf16.msra.mxu1 %v2381_v32  ;;  %565 = vmatpush.bf16.msra.mxu3 %v2383_v33 }
  0x42   : > { %718 = vperm.xlu0 %1897, %v713_v54  }
  0x43   : > { %524 = vmatpush.bf16.msra.mxu0 %v2407_v45  ;;  %551 = vmatpush.bf16.msra.mxu2 %v2409_v46 }
  0x44   : > { %538 = vmatpush.bf16.msra.mxu1 %v2414_v49  ;;  %566 = vmatpush.bf16.msra.mxu3 %v2416_v50 }
  0x46   : > { %525 = vmatmul.bf16.vlgmr.msra.gmra.mxu0 %v1860_v53 }
  0x47   : > { %747 = vmatpush.bf16.msrb.mxu0 %v2135_v5  ;;  %539 = vmatmul.bf16.vlgmr.msra.gmra.mxu1 %v1860_v53 }
  0x48   : > { %761 = vmatpush.bf16.msrb.mxu1 %v2146_v9  ;;  %567 = vmatmul.bf16.vlgmr.msra.gmra.mxu3 %v1860_v53 }
  0x49   : > { %552 = vmatpush.bf16.msra.mxu2 %v2430_v57  ;;  %789 = vmatpush.bf16.msrb.mxu3 %v2148_v10 }
  0x4a   : > { %1408 = vperm.xlu0 %1897, %v1405_v61  }
  0x4b   : > { %748 = vmatpush.bf16.msrb.mxu0 %v2160_v14 }
  0x4c   : > { %762 = vmatpush.bf16.msrb.mxu1 %v2173_v18  ;;  %553 = vmatmul.bf16.vlgmr.msra.gmra.mxu2 %v1860_v53 }
  0x4d   : > { %775 = vmatpush.bf16.msrb.mxu2 %v2186_v23  ;;  %790 = vmatpush.bf16.msrb.mxu3 %v2175_v19 }
  0x4f   : > { %749 = vmatpush.bf16.msrb.mxu0 %v2208_v30 }
  0x50   : > { %763 = vmatpush.bf16.msrb.mxu1 %v2221_v34 }
  0x51   : > { %776 = vmatpush.bf16.msrb.mxu2 %v2225_v36  ;;  %791 = vmatpush.bf16.msrb.mxu3 %v2223_v35 }
  0x53   : > { %750 = vmatpush.bf16.msrb.mxu0 %v2247_v43 }
  0x54   : > { %764 = vmatpush.bf16.msrb.mxu1 %v2259_v47 }
  0x55   : > { %777 = vmatpush.bf16.msrb.mxu2 %v2249_v44  ;;  %792 = vmatpush.bf16.msrb.mxu3 %v2261_v48 }
  0x57   : > { %751 = vmatpush.bf16.msrb.mxu0 %v2283_v55 }
  0x58   : > { %765 = vmatpush.bf16.msrb.mxu1 %v2295_v59 }
  0x59   : > { %778 = vmatpush.bf16.msrb.mxu2 %v2285_v56  ;;  %793 = vmatpush.bf16.msrb.mxu3 %v2297_v60 }
  0x5b   : > { %752 = vmatpush.bf16.msrb.mxu0 %v2322_v4 }
  0x5c   : > { %766 = vmatpush.bf16.msrb.mxu1 %v2338_v13 }
  0x5d   : > { %779 = vmatpush.bf16.msrb.mxu2 %v2324_v6  ;;  %794 = vmatpush.bf16.msrb.mxu3 %v2340_v15 }
  0x5f   : > { %753 = vmatpush.bf16.msrb.mxu0 %v2368_v26 }
  0x60   : > { %767 = vmatpush.bf16.msrb.mxu1 %v2381_v32 }
  0x61   : > { %780 = vmatpush.bf16.msrb.mxu2 %v2370_v27  ;;  %795 = vmatpush.bf16.msrb.mxu3 %v2383_v33 }
  0x63   : > { %754 = vmatpush.bf16.msrb.mxu0 %v2407_v45 }
  0x64   : > { %768 = vmatpush.bf16.msrb.mxu1 %v2414_v49 }
  0x65   : > { %781 = vmatpush.bf16.msrb.mxu2 %v2409_v46  ;;  %796 = vmatpush.bf16.msrb.mxu3 %v2416_v50 }
  0x67   : > { %978 = vmatpush.bf16.msra.mxu0 %v2135_v5 }
  0x68   : > { %992 = vmatpush.bf16.msra.mxu1 %v2146_v9 }
  0x69   : > { %782 = vmatpush.bf16.msrb.mxu2 %v2430_v57  ;;  %1020 = vmatpush.bf16.msra.mxu3 %v2148_v10 }
  0x6b   : > { %979 = vmatpush.bf16.msra.mxu0 %v2160_v14 }
  0x6c   : > { %993 = vmatpush.bf16.msra.mxu1 %v2173_v18 }
  0x6d   : > { %1006 = vmatpush.bf16.msra.mxu2 %v2186_v23  ;;  %1021 = vmatpush.bf16.msra.mxu3 %v2175_v19 }
  0x6f   : > { %980 = vmatpush.bf16.msra.mxu0 %v2208_v30 }
  0x70   : > { %994 = vmatpush.bf16.msra.mxu1 %v2221_v34 }
  0x71   : > { %1007 = vmatpush.bf16.msra.mxu2 %v2225_v36  ;;  %1022 = vmatpush.bf16.msra.mxu3 %v2223_v35 }
  0x73   : > { %981 = vmatpush.bf16.msra.mxu0 %v2247_v43 }
  0x74   : > { %995 = vmatpush.bf16.msra.mxu1 %v2259_v47 }
  0x75   : > { %1008 = vmatpush.bf16.msra.mxu2 %v2249_v44  ;;  %1023 = vmatpush.bf16.msra.mxu3 %v2261_v48 }
  0x77   : > { %982 = vmatpush.bf16.msra.mxu0 %v2283_v55 }
  0x78   : > { %996 = vmatpush.bf16.msra.mxu1 %v2295_v59 }
  0x79   : > { %1009 = vmatpush.bf16.msra.mxu2 %v2285_v56  ;;  %1024 = vmatpush.bf16.msra.mxu3 %v2297_v60 }
  0x7b   : > { %983 = vmatpush.bf16.msra.mxu0 %v2322_v4 }
  0x7c   : > { %997 = vmatpush.bf16.msra.mxu1 %v2338_v13 }
  0x7d   : > { %1010 = vmatpush.bf16.msra.mxu2 %v2324_v6  ;;  %1025 = vmatpush.bf16.msra.mxu3 %v2340_v15 }
  0x7f   : > { %984 = vmatpush.bf16.msra.mxu0 %v2368_v26 }
  0x80   : > { %998 = vmatpush.bf16.msra.mxu1 %v2381_v32 }
  0x81   : > { %1011 = vmatpush.bf16.msra.mxu2 %v2370_v27  ;;  %1026 = vmatpush.bf16.msra.mxu3 %v2383_v33 }
  0x83   : > { %985 = vmatpush.bf16.msra.mxu0 %v2407_v45 }
  0x84   : > { %999 = vmatpush.bf16.msra.mxu1 %v2414_v49 }
  0x85   : > { %1012 = vmatpush.bf16.msra.mxu2 %v2409_v46  ;;  %1027 = vmatpush.bf16.msra.mxu3 %v2416_v50 }
  0x89   : > { %1013 = vmatpush.bf16.msra.mxu2 %v2430_v57 }
  0xc3   : > { %v526_v1 = vpop.f32.mrf.mxu0 }
  0xc4   : > { %v573_v2 = vadd.f32 %v526_v1, %v343_v63  ;;  %v540_v3 = vpop.f32.mrf.mxu1 }
  0xc5   : > { %v574_v8 = vadd.f32 %v540_v3, %v344_v0 }
  0xc6   : > { %v1750_v12 = vmul.f32 -1.442695, %v573_v2 }
  0xc7   : > { %v1752_v16 = vmul.f32 -1.442695, %v574_v8 }
  0xc8   : > { %1900 = vpow2.f32 %v1750_v12 }
  0xc9   : > { %1902 = vpow2.f32 %v1752_v16 }
  0xcb   : > { %v568_v25 = vpop.f32.mrf.mxu3  ;;  %v528_v29 = vpop.f32.mrf.mxu0 }
  0xcc   : > { %v576_v28 = vadd.f32 %v568_v25, %v346_v17  ;;  %v577_v31 = vadd.f32 %v528_v29, %v347_v20  ;;  %v542_v37 = vpop.f32.mrf.mxu1 }
  0xcd   : > { %v578_v41 = vadd.f32 %v542_v37, %v348_v21 }
  0xce   : > { %v1754_v40 = vmul.f32 -1.442695, %v576_v28  ;;  %v1901_v42 = vpop.eup %1900  ;;  %v1751_v51 = vmul.f32 -1.442695, %v577_v31 }
  0xcf   : > { %v1903_v53 = vpop.eup %1902  ;;  %v587_v54 = vadd.f32 1.0, %v1901_v42  ;;  %v1753_v61 = vmul.f32 -1.442695, %v578_v41  ;;  %v554_v0 = vpop.f32.mrf.mxu2 }
  0xd0   : > { %1904 = vpow2.f32 %v1754_v40  ;;  %v625_v63 = vadd.f32 1.0, %v1903_v53  ;;  %v575_v1 = vadd.f32 %v554_v0, %v345_v52 }
  0xd1   : > { %1906 = vpow2.f32 %v1751_v51  ;;  %v598_v37 = vand.u32 2147483647, %v587_v54  ;;  %v600_v41 = vand.u32 2147483648, %v587_v54  ;;  %vm594_vm4 = vweird.f32 %v587_v54 }
  0xd2   : > { %1908 = vrcp.f32 %v587_v54  ;;  %v636_v42 = vand.u32 2147483647, %v625_v63  ;;  %v638_v53 = vand.u32 2147483648, %v625_v63  ;;  %vm632_vm7 = vweird.f32 %v625_v63 }
  0xd3   : > { %1910 = vrcp.f32 %v625_v63  ;;  %v570_v2 = vpop.f32.mrf.mxu3  ;;  %vm2521_vm6 = vcmp.eq.f32.partialorder %v598_v37, 8.507059e+37  ;;  %v337_v37 = vld [vmem:[#allocation3] sm:$0xff] }
  0xd4   : > { %1912 = vpow2.f32 %v1753_v61  ;;  %v580_v3 = vadd.f32 %v570_v2, %v350_v62  ;;  %v349_v62 = vunpack.c.l.bf16 %v2506_v38  ;;  %v601_v38 = vor.u32 1.1754944e-38, %v600_v41 }
  0xd5   : > { %1914 = vtanh.f32 %v575_v1  ;;  %vm2530_vm9 = vcmp.eq.f32.partialorder %v636_v42, 8.507059e+37 }
  0xd6   : > { %v1905_v8 = vpop.eup %1904  ;;  %v1755_v11 = vmul.f32 -1.442695, %v580_v3 }
  0xd7   : > { %v1907_v12 = vpop.eup %1906  ;;  %v2509_v16 = vadd.f32 1.0, %v1905_v8 }
  0xd8   : > { %v1909_v7 = vpop.eup %1908  ;;  %v2511_v17 = vadd.f32 1.0, %v1907_v12  ;;  %1916 = vpow2.f32 %v1755_v11  ;;  %v556_v11 = vpop.f32.mrf.mxu2 }
  0xd9   : > { %v1911_v20 = vpop.eup %1910  ;;  %v590_v21 = vmul.f32 %v1909_v7, %v587_v54  ;;  %1918 = vrcp.f32 %v2509_v16  ;;  %vm595_vm3 = vweird.f32 %v1909_v7 }
  0xda   : > { %v1913_v25 = vpop.eup %1912  ;;  %v628_v28 = vmul.f32 %v1911_v20, %v625_v63  ;;  %1920 = vrcp.f32 %v2511_v17  ;;  %vm633_vm5 = vweird.f32 %v1911_v20  ;;  %vm596_vm8 = vmor %vm594_vm4, %vm595_vm3  ;;  %v639_v63 = vor.u32 1.1754944e-38, %v638_v53 }
  0xdb   : > { %v591_v29 = vsub.f32 1.0, %v590_v21  ;;  %v2515_v31 = vadd.f32 1.0, %v1913_v25  ;;  %v1915_v51 = vpop.eup %1914  ;;  %vm634_vm10 = vmor %vm632_vm7, %vm633_vm5  ;;  %v613_v41 = vand.u32 2147483647, %v2511_v17  ;;  %v615_v50 = vand.u32 2147483648, %v2511_v17 }
  0xdc   : > { %v629_v40 = vsub.f32 1.0, %v628_v28  ;;  %vm609_vm12 = vweird.f32 %v2511_v17  ;;  %v2897_v25 = vmov 0   ;;  %vm672_vm7 = vweird.f32 %v2509_v16 }
  0xdd   : > { %1922 = vrcp.f32 %v2515_v31  ;;  %v592_v52 = vmul.f32 %v1909_v7, %v591_v29  ;;  %vm614_vm15 = vcmp.eq.f32.partialorder %v613_v41, 8.507059e+37  ;;  %vm647_vm3 = vweird.f32 %v2515_v31 }
  0xde   : > { %v1917_v61 = vpop.eup %1916  ;;  %v630_v0 = vmul.f32 %v1911_v20, %v629_v40 }
  0xdf   : > { %v2519_v1 = vpop.eup %1918  ;;  %v593_v2 = vadd.f32 %v1909_v7, %v592_v52  ;;  %v2525_v8 = vadd.f32 1.0, %v1917_v61  ;;  %v579_v52 = vadd.f32 %v556_v11, %v349_v62 }
  0xe0   : > { %v1921_v12 = vpop.eup %1920  ;;  %v668_v54 = vmul.f32 %v2519_v1, %v2509_v16  ;;  %v631_v21 = vadd.f32 %v1911_v20, %v630_v0  ;;  %vm673_vm4 = vweird.f32 %v2519_v1 }
  0xe1   : > { %v605_v28 = vmul.f32 %v1921_v12, %v2511_v17  ;;  %v597_v29 = vsel %vm596_vm8, %v1909_v7, %v593_v2  ;;  %1924 = vrcp.f32 %v2525_v8  ;;  %v2544_v2 = vpop.permute.xlu0 %715  ;;  %vm610_vm13 = vweird.f32 %v1921_v12  ;;  %vm674_vm8 = vmor %vm672_vm7, %vm673_vm4 }
  0xe2   : > { %v602_v40 = vsel %vm2521_vm6, %v601_v38, %v597_v29  ;;  %v635_v61 = vsel %vm634_vm10, %v1911_v20, %v631_v21  ;;  %v669_v57 = vsub.f32 1.0, %v668_v54  ;;  %vm720_vm11 = vcmp.eq.s32.totalorder %v2544_v2, 1  ;;  %vm611_vm0 = vmor %vm609_vm12, %vm610_vm13 }
  0xe3   : > { %v1923_v42 = vpop.eup %1922  ;;  %v606_v0 = vsub.f32 1.0, %v605_v28  ;;  %v699_v22 = vmul.f32 %v1915_v51, %v602_v40  ;;  %v640_v7 = vsel %vm2530_vm9, %v639_v63, %v635_v61  ;;  %v938_v20 = vstv %s937_s9 }
  0xe4   : > { %v643_v53 = vmul.f32 %v1923_v42, %v2515_v31  ;;  %v697_v3 = vmul.f32 %v640_v7, %v337_v37  ;;  %1926 = vtanh.f32 %v579_v52  ;;  %vm939_vm14 = vcmp.lt.s32.totalorder %v938_v20, %v2358_v24 }
  0xe5   : > { %v607_v62 = vmul.f32 %v1921_v12, %v606_v0  ;;  %v616_v54 = vor.u32 1.1754944e-38, %v615_v50  ;;  %v943_v28 = vsel %vm939_vm14, 1, %v2897_v25  ;;  %v670_v29 = vmul.f32 %v2519_v1, %v669_v57 }
  0xe6   : > { %v644_v11 = vsub.f32 1.0, %v643_v53  ;;  %v701_v51 = vadd.f32 %v699_v22, %v697_v3  ;;  %v653_v22 = vand.u32 2147483648, %v2515_v31  ;;  %946 = vperm.xlu1 %1898, %v943_v28   ;;  %vm648_vm1 = vweird.f32 %v1923_v42 }
  0xe7   : > { %v2550_v38 = vpop.eup %1924  ;;  %v608_v21 = vadd.f32 %v1921_v12, %v607_v62  ;;  %v651_v50 = vand.u32 2147483647, %v2515_v31  ;;  %vm940_vm2 = vcmp.lt.s32.totalorder %v938_v20, %v2394_v39  ;;  %v678_v7 = vand.u32 2147483648, %v2509_v16  ;;  %vm649_vm5 = vmor %vm647_vm3, %vm648_vm1 }
  0xe8   : > { %v683_v63 = vmul.f32 %v2550_v38, %v2525_v8  ;;  %v2558_v17 = vsel %vm720_vm11, %v701_v51, %v337_v37  ;;  %v645_v52 = vmul.f32 %v1923_v42, %v644_v11  ;;  %1928 = vtanh.f32 %v701_v51  ;;  %vm722_vm1 = vmpackc.low %vm720_vm11, %vm720_vm11 }
  0xe9   : > { %v612_v40 = vsel %vm611_vm0, %v1921_v12, %v608_v21  ;;  %v671_v37 = vadd.f32 %v2519_v1, %v670_v29  ;;  %v338_v12 = vld [vmem:[#allocation3 + $0x8] sm:$0xff]  ;;  %v654_v53 = vor.u32 1.1754944e-38, %v653_v22  ;;  %vm652_vm6 = vcmp.eq.f32.partialorder %v651_v50, 8.507059e+37 }
  0xea   : > { %v684_v41 = vsub.f32 1.0, %v683_v63  ;;  %v617_v61 = vsel %vm614_vm15, %v616_v54, %v612_v40  ;;  %v646_v57 = vadd.f32 %v1923_v42, %v645_v52  ;;  %v1927_v0 = vpop.eup %1926  ;;  %v944_v11 = vsel %vm940_vm2, 1, %v2897_v25  ;;  %v719_v54 = vpop.permute.xlu0 %718 }
  0xeb   : > { %v700_v3 = vmul.f32 %v1927_v0, %v617_v61  ;;  %v676_v31 = vand.u32 2147483647, %v2509_v16  ;;  %v675_v28 = vsel %vm674_vm8, %v2519_v1, %v671_v37  ;;  %vm721_vm9 = vcmp.eq.s32.totalorder %v719_v54, 1  ;;  %v335_v37 = vld [vmem:[#allocation2] sm:$0xf] }
  0xec   : > { %v650_v62 = vsel %vm649_vm5, %v1923_v42, %v646_v57  ;;  %v685_v20 = vmul.f32 %v2550_v38, %v684_v41  ;;  %v679_v63 = vor.u32 1.1754944e-38, %v678_v7  ;;  %vm688_vm12 = vweird.f32 %v2550_v38  ;;  %vm723_vm2 = vmpackc.low %vm721_vm9, %vm721_vm9 }
  0xed   : > { %v655_v51 = vsel %vm652_vm6, %v654_v53, %v650_v62  ;;  %vm677_vm10 = vcmp.eq.f32.partialorder %v676_v31, 8.507059e+37  ;;  %vm1402_vm13 = vcmp.lt.s32.totalorder %v2432_v58, %v2394_v39  ;;  %v693_v40 = vand.u32 2147483648, %v2525_v8  ;;  %v336_v53 = vld [vmem:[#allocation2 + $0x4] sm:$0xf] }
  0xee   : > { %v698_v21 = vmul.f32 %v655_v51, %v338_v12  ;;  %949 = vperm.xlu1 %1898, %v944_v11   ;;  %v1929_v29 = vpop.eup %1928  ;;  %v686_v22 = vadd.f32 %v2550_v38, %v685_v20  ;;  %v680_v16 = vsel %vm677_vm10, %v679_v63, %v675_v28  ;;  %vm687_vm14 = vweird.f32 %v2525_v8 }
  0xef   : > { %v705_v1 = vmul.f32 %v1929_v29, %v680_v16  ;;  %v691_v50 = vand.u32 2147483647, %v2525_v8  ;;  %vm689_vm15 = vmor %vm687_vm14, %vm688_vm12  ;;  %v1406_v41 = vsel %vm1402_vm13, 1, %v2897_v25  ;;  %v694_v57 = vor.u32 1.1754944e-38, %v693_v40 }
  0xf0   : > { %v702_v42 = vadd.f32 %v700_v3, %v698_v21  ;;  %v690_v61 = vsel %vm689_vm15, %v2550_v38, %v686_v22 }
  0xf1   : > { %v710_v0 = vpack.c.bf16 %v705_v1, %v705_v1  ;;  %vm692_vm0 = vcmp.eq.f32.partialorder %v691_v50, 8.507059e+37 }
  0xf2   : > { %1930 = vtanh.f32 %v702_v42  ;;  %v2578_v52 = vsel %vm721_vm9, %v702_v42, %v338_v12  ;;  %v695_v7 = vsel %vm692_vm0, %v694_v57, %v690_v61 }
  0xf3   : > { %v2587_v3 = vsel %vm722_vm1, %v710_v0, %v335_v37 }
  0xf4   : > { %v743_v62 = vunpack.c.l.b16 %v2587_v3 }
  0xf6   : > { %1411 = vperm.xlu1 %1898, %v1406_v41  }
  0xf8   : > { %v1931_v58 = vpop.eup %1930 }
  0xf9   : > { %v706_v12 = vmul.f32 %v1931_v58, %v695_v7 }
  0xfb   : > { %v711_v8 = vpack.c.bf16 %v706_v12, %v706_v12 }
  0xfd   : > { %v2591_v38 = vsel %vm723_vm2, %v711_v8, %v336_v53 }
  0xfe   : > { %v744_v11 = vunpack.c.l.b16 %v2591_v38 }
 0x100   : > { %v745_v20 = vpack.c.b16 %v744_v11, %v743_v62 }
 0x102   : > { %755 = vmatmul.bf16.vlgmr.msrb.gmra.mxu0 %v745_v20  ;;  %769 = vmatmul.bf16.vlgmr.msrb.gmra.mxu1 %v745_v20 }
 0x103   : > { %783 = vmatmul.bf16.vlgmr.msrb.gmra.mxu2 %v745_v20  ;;  %797 = vmatmul.bf16.vlgmr.msrb.gmra.mxu3 %v745_v20 }
 0x104   : > { %1209 = vmatpush.bf16.msrb.mxu0 %v2135_v5  ;;  %1223 = vmatpush.bf16.msrb.mxu1 %v2146_v9  ;;  %v2898_v5 = vld [vmem:[#allocation7_spill] sm:$0xff]  ;;  %v2899_v9 = vld [vmem:[#allocation6_spill] sm:$0xff] }
 0x105   : > { %1237 = vmatpush.bf16.msrb.mxu2 %v2186_v23  ;;  %1251 = vmatpush.bf16.msrb.mxu3 %v2148_v10  ;;  %v1756_v10 = vld [vmem:[%s2122_s7 + $0x20] sm:$0xff] }
 0x108   : > { %1210 = vmatpush.bf16.msrb.mxu0 %v2160_v14  ;;  %1224 = vmatpush.bf16.msrb.mxu1 %v2173_v18  ;;  %v733_v14 = vunpack.c.l.bf16 %v1756_v10  ;;  %v734_v18 = vunpack.c.h.bf16 %v1756_v10 }
 0x109   : > { %1238 = vmatpush.bf16.msrb.mxu2 %v2225_v36  ;;  %1252 = vmatpush.bf16.msrb.mxu3 %v2175_v19  ;;  %v1758_v36 = vld [vmem:[%s2122_s7 + $0x30] sm:$0xff] }
 0x10c   : > { %1211 = vmatpush.bf16.msrb.mxu0 %v2208_v30  ;;  %1225 = vmatpush.bf16.msrb.mxu1 %v2221_v34 }
 0x10d   : > { %1239 = vmatpush.bf16.msrb.mxu2 %v2249_v44  ;;  %1253 = vmatpush.bf16.msrb.mxu3 %v2223_v35  ;;  %v1757_v35 = vld [vmem:[%s2122_s7 + $0x28] sm:$0xff] }
 0x10e   : > { %v735_v21 = vunpack.c.l.bf16 %v1757_v35 }
 0x110   : > { %1212 = vmatpush.bf16.msrb.mxu0 %v2247_v43  ;;  %1226 = vmatpush.bf16.msrb.mxu1 %v2259_v47  ;;  %v736_v47 = vunpack.c.h.bf16 %v1757_v35 }
 0x111   : > { %1240 = vmatpush.bf16.msrb.mxu2 %v2285_v56  ;;  %1254 = vmatpush.bf16.msrb.mxu3 %v2261_v48  ;;  %v737_v48 = vunpack.c.l.bf16 %v1758_v36 }
 0x114   : > { %1213 = vmatpush.bf16.msrb.mxu0 %v2283_v55  ;;  %1227 = vmatpush.bf16.msrb.mxu1 %v2295_v59  ;;  %v738_v55 = vunpack.c.h.bf16 %v1758_v36 }
 0x115   : > { %1241 = vmatpush.bf16.msrb.mxu2 %v2324_v6  ;;  %1255 = vmatpush.bf16.msrb.mxu3 %v2297_v60 }
 0x118   : > { %1214 = vmatpush.bf16.msrb.mxu0 %v2322_v4  ;;  %1228 = vmatpush.bf16.msrb.mxu1 %v2338_v13 }
 0x119   : > { %1242 = vmatpush.bf16.msrb.mxu2 %v2370_v27  ;;  %1256 = vmatpush.bf16.msrb.mxu3 %v2340_v15 }
 0x11c   : > { %1215 = vmatpush.bf16.msrb.mxu0 %v2368_v26  ;;  %1229 = vmatpush.bf16.msrb.mxu1 %v2381_v32  ;;  %v1759_v26 = vld [vmem:[%s2122_s7 + $0x38] sm:$0xff] }
 0x11d   : > { %1243 = vmatpush.bf16.msrb.mxu2 %v2409_v46  ;;  %1257 = vmatpush.bf16.msrb.mxu3 %v2383_v33  ;;  %v740_v2 = vunpack.c.h.bf16 %v1759_v26  ;;  %v739_v57 = vunpack.c.l.bf16 %v1759_v26 }
 0x120   : > { %1216 = vmatpush.bf16.msrb.mxu0 %v2407_v45  ;;  %1230 = vmatpush.bf16.msrb.mxu1 %v2414_v49 }
 0x121   : > { %1244 = vmatpush.bf16.msrb.mxu2 %v2898_v5  ;;  %1258 = vmatpush.bf16.msrb.mxu3 %v2899_v9 }
 0x158   : > { %v2640_v11 = vpop.permute.xlu1 %946 }
 0x159   : > { %vm951_vm4 = vcmp.eq.s32.totalorder %v2640_v11, 1 }
 0x17f   : > { %v756_v19 = vpop.f32.mrf.mxu0  ;;  %v770_v23 = vpop.f32.mrf.mxu1 }
 0x180   : > { %v803_v30 = vadd.f32 %v756_v19, %v733_v14  ;;  %v804_v34 = vadd.f32 %v770_v23, %v734_v18 }
 0x182   : > { %v1760_v43 = vmul.f32 -1.442695, %v803_v30  ;;  %v1762_v44 = vmul.f32 -1.442695, %v804_v34 }
 0x184   : > { %1932 = vpow2.f32 %v1760_v43 }
 0x185   : > { %1934 = vpow2.f32 %v1762_v44 }
 0x186   : > { %v798_v56 = vpop.f32.mrf.mxu3  ;;  %v784_v31 = vpop.f32.mrf.mxu2 }
 0x187   : > { %v806_v59 = vadd.f32 %v798_v56, %v736_v47  ;;  %v758_v60 = vpop.f32.mrf.mxu0  ;;  %v772_v4 = vpop.f32.mrf.mxu1  ;;  %v805_v16 = vadd.f32 %v784_v31, %v735_v21 }
 0x188   : > { %v807_v6 = vadd.f32 %v758_v60, %v737_v48  ;;  %v808_v13 = vadd.f32 %v772_v4, %v738_v55 }
 0x189   : > { %v1764_v15 = vmul.f32 -1.442695, %v806_v59 }
 0x18a   : > { %v1933_v27 = vpop.eup %1932  ;;  %v1761_v32 = vmul.f32 -1.442695, %v807_v6  ;;  %v1763_v46 = vmul.f32 -1.442695, %v808_v13 }
 0x18b   : > { %v1935_v33 = vpop.eup %1934  ;;  %v817_v45 = vadd.f32 1.0, %v1933_v27  ;;  %1936 = vpow2.f32 %v1764_v15 }
 0x18c   : > { %v855_v49 = vadd.f32 1.0, %v1935_v33  ;;  %1938 = vpow2.f32 %v1761_v32  ;;  %v1169_v32 = vstv %s1168_s10 }
 0x18d   : > { %1940 = vrcp.f32 %v817_v45  ;;  %v828_v58 = vand.u32 2147483647, %v817_v45  ;;  %v830_v12 = vand.u32 2147483648, %v817_v45  ;;  %vm824_vm5 = vweird.f32 %v817_v45 }
 0x18e   : > { %1942 = vrcp.f32 %v855_v49  ;;  %v800_v51 = vpop.f32.mrf.mxu3  ;;  %v866_v53 = vand.u32 2147483647, %v855_v49  ;;  %v786_v62 = vpop.f32.mrf.mxu2  ;;  %v868_v20 = vand.u32 2147483648, %v855_v49  ;;  %vm862_vm7 = vweird.f32 %v855_v49 }
 0x18f   : > { %1944 = vpow2.f32 %v1763_v46  ;;  %v810_v54 = vadd.f32 %v800_v51, %v740_v2  ;;  %vm2645_vm6 = vcmp.eq.f32.partialorder %v828_v58, 8.507059e+37  ;;  %v831_v19 = vor.u32 1.1754944e-38, %v830_v12  ;;  %v950_v12 = vpop.permute.xlu1 %949 }
 0x190   : > { %v809_v30 = vadd.f32 %v786_v62, %v739_v57  ;;  %vm867_vm10 = vcmp.eq.f32.partialorder %v866_v53, 8.507059e+37  ;;  %v869_v44 = vor.u32 1.1754944e-38, %v868_v20  ;;  %vm1170_vm14 = vcmp.lt.s32.totalorder %v1169_v32, %v2358_v24 }
 0x191   : > { %v1937_v28 = vpop.eup %1936  ;;  %v1765_v42 = vmul.f32 -1.442695, %v810_v54 }
 0x192   : > { %v1939_v29 = vpop.eup %1938  ;;  %v2631_v63 = vadd.f32 1.0, %v1937_v28 }
 0x193   : > { %v1941_v22 = vpop.eup %1940  ;;  %v2633_v40 = vadd.f32 1.0, %v1939_v29 }
 0x194   : > { %v1943_v1 = vpop.eup %1942  ;;  %v820_v50 = vmul.f32 %v1941_v22, %v817_v45  ;;  %1946 = vrcp.f32 %v2631_v63  ;;  %vm825_vm11 = vweird.f32 %v1941_v22 }
 0x195   : > { %v1945_v41 = vpop.eup %1944  ;;  %v858_v61 = vmul.f32 %v1943_v1, %v855_v49  ;;  %1948 = vrcp.f32 %v2633_v40  ;;  %vm863_vm3 = vweird.f32 %v1943_v1  ;;  %vm826_vm8 = vmor %vm824_vm5, %vm825_vm11  ;;  %v845_v55 = vand.u32 2147483648, %v2633_v40 }
 0x196   : > { %v821_v0 = vsub.f32 1.0, %v820_v50  ;;  %v2637_v37 = vadd.f32 1.0, %v1945_v41  ;;  %1950 = vpow2.f32 %v1765_v42  ;;  %vm864_vm9 = vmor %vm862_vm7, %vm863_vm3  ;;  %v843_v45 = vand.u32 2147483647, %v2633_v40 }
 0x197   : > { %v859_v7 = vsub.f32 1.0, %v858_v61  ;;  %1952 = vtanh.f32 %v805_v16  ;;  %vm839_vm13 = vweird.f32 %v2633_v40  ;;  %v846_v49 = vor.u32 1.1754944e-38, %v845_v55 }
 0x198   : > { %v822_v8 = vmul.f32 %v1941_v22, %v821_v0  ;;  %1954 = vrcp.f32 %v2637_v37  ;;  %v883_v21 = vand.u32 2147483648, %v2637_v37  ;;  %v881_v29 = vand.u32 2147483647, %v2637_v37 }
 0x199   : > { %v860_v5 = vmul.f32 %v1943_v1, %v859_v7  ;;  %vm844_vm1 = vcmp.eq.f32.partialorder %v843_v45, 8.507059e+37  ;;  %v1174_v16 = vsel %vm1170_vm14, 1, %v2897_v25  ;;  %vm877_vm2 = vweird.f32 %v2637_v37 }
 0x19a   : > { %v2643_v9 = vpop.eup %1946  ;;  %v823_v10 = vadd.f32 %v1941_v22, %v822_v8  ;;  %1177 = vperm.xlu2 %1899, %v1174_v16   ;;  %v884_v61 = vor.u32 1.1754944e-38, %v883_v21  ;;  %vm882_vm5 = vcmp.eq.f32.partialorder %v881_v29, 8.507059e+37  ;;  %vm902_vm7 = vweird.f32 %v2631_v63  ;;  %v1769_v29 = vld [vmem:[%s2122_s7 + $0x58] sm:$0xff] }
 0x19b   : > { %v1949_v18 = vpop.eup %1948  ;;  %v898_v23 = vmul.f32 %v2643_v9, %v2631_v63  ;;  %v861_v34 = vadd.f32 %v1943_v1, %v860_v5  ;;  %vm903_vm11 = vweird.f32 %v2643_v9 }
 0x19c   : > { %v1951_v35 = vpop.eup %1950  ;;  %v827_v36 = vsel %vm826_vm8, %v1941_v22, %v823_v10  ;;  %v835_v43 = vmul.f32 %v1949_v18, %v2633_v40  ;;  %vm840_vm12 = vweird.f32 %v1949_v18  ;;  %v908_v22 = vand.u32 2147483648, %v2631_v63  ;;  %vm904_vm8 = vmor %vm902_vm7, %vm903_vm11 }
 0x19d   : > { %v1953_v47 = vpop.eup %1952  ;;  %v832_v48 = vsel %vm2645_vm6, %v831_v19, %v827_v36  ;;  %v2657_v56 = vadd.f32 1.0, %v1951_v35  ;;  %v865_v59 = vsel %vm864_vm9, %v1943_v1, %v861_v34  ;;  %v899_v6 = vsub.f32 1.0, %v898_v23  ;;  %vm841_vm15 = vmor %vm839_vm13, %vm840_vm12 }
 0x19e   : > { %v1955_v60 = vpop.eup %1954  ;;  %v929_v4 = vmul.f32 %v1953_v47, %v832_v48  ;;  %v836_v13 = vsub.f32 1.0, %v835_v43  ;;  %v870_v15 = vsel %vm867_vm10, %v869_v44, %v865_v59  ;;  %vm1171_vm6 = vcmp.lt.s32.totalorder %v1169_v32, %v2394_v39 }
 0x19f   : > { %v873_v26 = vmul.f32 %v1955_v60, %v2637_v37  ;;  %1956 = vrcp.f32 %v2657_v56  ;;  %v927_v27 = vmul.f32 %v870_v15, %v2558_v17  ;;  %v900_v31 = vmul.f32 %v2643_v9, %v899_v6  ;;  %v1767_v15 = vld [vmem:[%s2122_s7 + $0x48] sm:$0xff] }
 0x1a0   : > { %v837_v33 = vmul.f32 %v1949_v18, %v836_v13  ;;  %1958 = vtanh.f32 %v809_v30  ;;  %vm878_vm0 = vweird.f32 %v1955_v60  ;;  %v906_v37 = vand.u32 2147483647, %v2631_v63 }
 0x1a1   : > { %v874_v46 = vsub.f32 1.0, %v873_v26  ;;  %v931_v2 = vadd.f32 %v929_v4, %v927_v27  ;;  %v901_v41 = vadd.f32 %v2643_v9, %v900_v31  ;;  %vm879_vm3 = vmor %vm877_vm2, %vm878_vm0  ;;  %vm952_vm9 = vcmp.eq.s32.totalorder %v950_v12, 1 }
 0x1a2   : > { %v838_v51 = vadd.f32 %v1949_v18, %v837_v33  ;;  %v1175_v20 = vsel %vm1171_vm6, 1, %v2897_v25  ;;  %v909_v10 = vor.u32 1.1754944e-38, %v908_v22  ;;  %vm907_vm10 = vcmp.eq.f32.partialorder %v906_v37, 8.507059e+37  ;;  %vm953_vm0 = vmpackc.low %vm951_vm4, %vm951_vm4 }
 0x1a3   : > { %v875_v54 = vmul.f32 %v1955_v60, %v874_v46  ;;  %v2670_v28 = vsel %vm951_vm4, %v931_v2, %v2558_v17  ;;  %1960 = vtanh.f32 %v931_v2  ;;  %v905_v62 = vsel %vm904_vm8, %v2643_v9, %v901_v41  ;;  %1180 = vperm.xlu2 %1899, %v1175_v20  }
 0x1a4   : > { %v842_v42 = vsel %vm841_vm15, %v1949_v18, %v838_v51  ;;  %v910_v18 = vsel %vm907_vm10, %v909_v10, %v905_v62  ;;  %v923_v63 = vand.u32 2147483648, %v2657_v56  ;;  %vm917_vm13 = vweird.f32 %v2657_v56 }
 0x1a5   : > { %v1957_v40 = vpop.eup %1956  ;;  %v847_v1 = vsel %vm844_vm1, %v846_v49, %v842_v42  ;;  %v876_v24 = vadd.f32 %v1955_v60, %v875_v54  ;;  %v921_v25 = vand.u32 2147483647, %v2657_v56  ;;  %vm954_vm1 = vmpackc.low %vm952_vm9, %vm952_vm9  ;;  %v967_v32 = vunpack.c.h.bf16 %v1767_v15 }
 0x1a6   : > { %v1959_v50 = vpop.eup %1958  ;;  %v913_v17 = vmul.f32 %v1957_v40, %v2657_v56  ;;  %vm918_vm12 = vweird.f32 %v1957_v40  ;;  %v924_v30 = vor.u32 1.1754944e-38, %v923_v63 }
 0x1a7   : > { %v930_v57 = vmul.f32 %v1959_v50, %v847_v1  ;;  %v880_v0 = vsel %vm879_vm3, %v1955_v60, %v876_v24  ;;  %vm919_vm14 = vmor %vm917_vm13, %vm918_vm12  ;;  %vm922_vm15 = vcmp.eq.f32.partialorder %v921_v25, 8.507059e+37  ;;  %v971_v50 = vunpack.c.h.bf16 %v1769_v29 }
 0x1a8   : > { %v914_v58 = vsub.f32 1.0, %v913_v17  ;;  %v885_v7 = vsel %vm882_vm5, %v884_v61, %v880_v0  ;;  %v966_v61 = vunpack.c.l.bf16 %v1767_v15 }
 0x1a9   : > { %v928_v53 = vmul.f32 %v885_v7, %v2578_v52  ;;  %v1961_v5 = vpop.eup %1960 }
 0x1aa   : > { %v915_v8 = vmul.f32 %v1957_v40, %v914_v58  ;;  %v935_v23 = vmul.f32 %v1961_v5, %v910_v18 }
 0x1ab   : > { %v932_v14 = vadd.f32 %v930_v57, %v928_v53 }
 0x1ac   : > { %v916_v39 = vadd.f32 %v1957_v40, %v915_v8  ;;  %v941_v34 = vpack.c.bf16 %v935_v23, %v935_v23 }
 0x1ad   : > { %1962 = vtanh.f32 %v932_v14  ;;  %v2689_v19 = vsel %vm952_vm9, %v932_v14, %v2578_v52  ;;  %v970_v14 = vunpack.c.l.bf16 %v1769_v29 }
 0x1ae   : > { %v920_v9 = vsel %vm919_vm14, %v1957_v40, %v916_v39  ;;  %v2697_v43 = vsel %vm953_vm0, %v941_v34, %v2587_v3  ;;  %v1766_v3 = vld [vmem:[%s2122_s7 + $0x40] sm:$0xff] }
 0x1af   : > { %v925_v36 = vsel %vm922_vm15, %v924_v30, %v920_v9  ;;  %v974_v48 = vunpack.c.l.b16 %v2697_v43  ;;  %v964_v56 = vunpack.c.l.bf16 %v1766_v3  ;;  %v965_v59 = vunpack.c.h.bf16 %v1766_v3 }
 0x1b3   : > { %v1963_v35 = vpop.eup %1962 }
 0x1b4   : > { %v936_v52 = vmul.f32 %v1963_v35, %v925_v36 }
 0x1b6   : > { %v942_v44 = vpack.c.bf16 %v936_v52, %v936_v52 }
 0x1b8   : > { %v2702_v47 = vsel %vm954_vm1, %v942_v44, %v2591_v38  ;;  %v1768_v38 = vld [vmem:[%s2122_s7 + $0x50] sm:$0xff] }
 0x1b9   : > { %v975_v11 = vunpack.c.l.b16 %v2702_v47  ;;  %v968_v33 = vunpack.c.l.bf16 %v1768_v38  ;;  %v969_v45 = vunpack.c.h.bf16 %v1768_v38 }
 0x1bb   : > { %v976_v55 = vpack.c.b16 %v975_v11, %v974_v48 }
 0x1bd   : > { %986 = vmatmul.bf16.vlgmr.msra.gmra.mxu0 %v976_v55  ;;  %1000 = vmatmul.bf16.vlgmr.msra.gmra.mxu1 %v976_v55 }
 0x1be   : > { %1014 = vmatmul.bf16.vlgmr.msra.gmra.mxu2 %v976_v55  ;;  %1028 = vmatmul.bf16.vlgmr.msra.gmra.mxu3 %v976_v55 }
 0x23a   : > { %v987_v60 = vpop.f32.mrf.mxu0  ;;  %v1001_v4 = vpop.f32.mrf.mxu1 }
 0x23b   : > { %v1034_v6 = vadd.f32 %v987_v60, %v964_v56  ;;  %v1035_v13 = vadd.f32 %v1001_v4, %v965_v59 }
 0x23d   : > { %v1770_v26 = vmul.f32 -1.442695, %v1034_v6  ;;  %v1772_v27 = vmul.f32 -1.442695, %v1035_v13  ;;  %v2728_v13 = vpop.permute.xlu2 %1177 }
 0x23e   : > { %vm1182_vm9 = vcmp.eq.s32.totalorder %v2728_v13, 1 }
 0x23f   : > { %1964 = vpow2.f32 %v1770_v26 }
 0x240   : > { %1966 = vpow2.f32 %v1772_v27 }
 0x241   : > { %v1029_v46 = vpop.f32.mrf.mxu3  ;;  %v1015_v17 = vpop.f32.mrf.mxu2 }
 0x242   : > { %v1037_v49 = vadd.f32 %v1029_v46, %v967_v32  ;;  %v989_v2 = vpop.f32.mrf.mxu0  ;;  %v1003_v31 = vpop.f32.mrf.mxu1  ;;  %v1036_v53 = vadd.f32 %v1015_v17, %v966_v61 }
 0x243   : > { %v1038_v51 = vadd.f32 %v989_v2, %v968_v33  ;;  %v1039_v21 = vadd.f32 %v1003_v31, %v969_v45 }
 0x244   : > { %v1774_v54 = vmul.f32 -1.442695, %v1037_v49 }
 0x245   : > { %v1965_v42 = vpop.eup %1964  ;;  %v1771_v22 = vmul.f32 -1.442695, %v1038_v51  ;;  %v1773_v1 = vmul.f32 -1.442695, %v1039_v21 }
 0x246   : > { %v1967_v16 = vpop.eup %1966  ;;  %v1048_v40 = vadd.f32 1.0, %v1965_v42  ;;  %1968 = vpow2.f32 %v1774_v54 }
 0x247   : > { %v1086_v24 = vadd.f32 1.0, %v1967_v16  ;;  %1970 = vpow2.f32 %v1771_v22 }
 0x248   : > { %1972 = vrcp.f32 %v1048_v40  ;;  %v1059_v18 = vand.u32 2147483647, %v1048_v40  ;;  %v1061_v25 = vand.u32 2147483648, %v1048_v40  ;;  %vm1055_vm11 = vweird.f32 %v1048_v40 }
 0x249   : > { %1974 = vrcp.f32 %v1086_v24  ;;  %v1031_v41 = vpop.f32.mrf.mxu3  ;;  %v1097_v9 = vand.u32 2147483647, %v1086_v24  ;;  %v1017_v34 = vpop.f32.mrf.mxu2  ;;  %v1099_v35 = vand.u32 2147483648, %v1086_v24  ;;  %vm1093_vm5 = vweird.f32 %v1086_v24 }
 0x24a   : > { %1976 = vpow2.f32 %v1773_v1  ;;  %v1041_v57 = vadd.f32 %v1031_v41, %v971_v50  ;;  %vm2721_vm3 = vcmp.eq.f32.partialorder %v1059_v18, 8.507059e+37  ;;  %v1062_v55 = vor.u32 1.1754944e-38, %v1061_v25 }
 0x24b   : > { %v1040_v56 = vadd.f32 %v1017_v34, %v970_v14  ;;  %vm1098_vm8 = vcmp.eq.f32.partialorder %v1097_v9, 8.507059e+37  ;;  %v1100_v15 = vor.u32 1.1754944e-38, %v1099_v35 }
 0x24c   : > { %v1969_v0 = vpop.eup %1968  ;;  %v1775_v7 = vmul.f32 -1.442695, %v1041_v57 }
 0x24d   : > { %v1971_v58 = vpop.eup %1970  ;;  %v2710_v37 = vadd.f32 1.0, %v1969_v0 }
 0x24e   : > { %v1973_v12 = vpop.eup %1972  ;;  %v2712_v8 = vadd.f32 1.0, %v1971_v58 }
 0x24f   : > { %v1975_v62 = vpop.eup %1974  ;;  %v1051_v20 = vmul.f32 %v1973_v12, %v1048_v40  ;;  %1978 = vrcp.f32 %v2710_v37  ;;  %vm1056_vm4 = vweird.f32 %v1973_v12  ;;  %v1137_v14 = vand.u32 2147483647, %v2710_v37 }
 0x250   : > { %v1977_v5 = vpop.eup %1976  ;;  %v1089_v10 = vmul.f32 %v1975_v62, %v1086_v24  ;;  %1980 = vrcp.f32 %v2712_v8  ;;  %vm1094_vm2 = vweird.f32 %v1975_v62  ;;  %vm1057_vm6 = vmor %vm1055_vm11, %vm1056_vm4  ;;  %v1076_v27 = vand.u32 2147483648, %v2712_v8 }
 0x251   : > { %v1052_v39 = vsub.f32 1.0, %v1051_v20  ;;  %v2716_v63 = vadd.f32 1.0, %v1977_v5  ;;  %1982 = vpow2.f32 %v1775_v7  ;;  %vm1095_vm7 = vmor %vm1093_vm5, %vm1094_vm2  ;;  %v1074_v29 = vand.u32 2147483647, %v2712_v8  ;;  %v1181_v20 = vpop.permute.xlu2 %1180 }
 0x252   : > { %v1090_v23 = vsub.f32 1.0, %v1089_v10  ;;  %1984 = vtanh.f32 %v1036_v53  ;;  %vm1070_vm12 = vweird.f32 %v2712_v8  ;;  %v1077_v1 = vor.u32 1.1754944e-38, %v1076_v27 }
 0x253   : > { %v1053_v30 = vmul.f32 %v1973_v12, %v1052_v39  ;;  %1986 = vrcp.f32 %v2716_v63  ;;  %v1114_v24 = vand.u32 2147483648, %v2716_v63  ;;  %v1112_v41 = vand.u32 2147483647, %v2716_v63 }
 0x254   : > { %v1091_v36 = vmul.f32 %v1975_v62, %v1090_v23  ;;  %vm1075_vm15 = vcmp.eq.f32.partialorder %v1074_v29, 8.507059e+37  ;;  %vm1108_vm0 = vweird.f32 %v2716_v63  ;;  %vm1133_vm11 = vweird.f32 %v2710_v37 }
 0x255   : > { %v2719_v52 = vpop.eup %1978  ;;  %v1054_v44 = vadd.f32 %v1973_v12, %v1053_v30  ;;  %vm1113_vm2 = vcmp.eq.f32.partialorder %v1112_v41, 8.507059e+37  ;;  %vm1183_vm5 = vcmp.eq.s32.totalorder %v1181_v20, 1 }
 0x256   : > { %v1981_v11 = vpop.eup %1980  ;;  %v1129_v3 = vmul.f32 %v2719_v52, %v2710_v37  ;;  %v1092_v59 = vadd.f32 %v1975_v62, %v1091_v36  ;;  %vm1134_vm1 = vweird.f32 %v2719_v52 }
 0x257   : > { %v1983_v60 = vpop.eup %1982  ;;  %v1058_v4 = vsel %vm1057_vm6, %v1973_v12, %v1054_v44  ;;  %v1066_v6 = vmul.f32 %v1981_v11, %v2712_v8  ;;  %vm1071_vm10 = vweird.f32 %v1981_v11  ;;  %vm1138_vm6 = vcmp.eq.f32.partialorder %v1137_v14, 8.507059e+37 }
 0x258   : > { %v1985_v38 = vpop.eup %1984  ;;  %v1063_v26 = vsel %vm2721_vm3, %v1062_v55, %v1058_v4  ;;  %v2734_v32 = vadd.f32 1.0, %v1983_v60  ;;  %v1096_v33 = vsel %vm1095_vm7, %v1975_v62, %v1092_v59  ;;  %v1130_v49 = vsub.f32 1.0, %v1129_v3  ;;  %vm1072_vm13 = vmor %vm1070_vm12, %vm1071_vm10 }
 0x259   : > { %v1987_v45 = vpop.eup %1986  ;;  %v1160_v46 = vmul.f32 %v1985_v38, %v1063_v26  ;;  %v1067_v2 = vsub.f32 1.0, %v1066_v6  ;;  %v1101_v31 = vsel %vm1098_vm8, %v1100_v15, %v1096_v33  ;;  %v1139_v62 = vand.u32 2147483648, %v2710_v37  ;;  %vm1135_vm3 = vmor %vm1133_vm11, %vm1134_vm1 }
 0x25a   : > { %v1104_v51 = vmul.f32 %v1987_v45, %v2716_v63  ;;  %1988 = vrcp.f32 %v2734_v32  ;;  %v1158_v21 = vmul.f32 %v1101_v31, %v2670_v28  ;;  %v1131_v16 = vmul.f32 %v2719_v52, %v1130_v49 }
 0x25b   : > { %v1068_v54 = vmul.f32 %v1981_v11, %v1067_v2  ;;  %1990 = vtanh.f32 %v1040_v56  ;;  %vm1109_vm14 = vweird.f32 %v1987_v45  ;;  %v1140_v9 = vor.u32 1.1754944e-38, %v1139_v62 }
 0x25c   : > { %v1105_v42 = vsub.f32 1.0, %v1104_v51  ;;  %v1162_v22 = vadd.f32 %v1160_v46, %v1158_v21  ;;  %v1132_v53 = vadd.f32 %v2719_v52, %v1131_v16  ;;  %vm1110_vm4 = vmor %vm1108_vm0, %vm1109_vm14  ;;  %v1154_v36 = vand.u32 2147483648, %v2734_v32  ;;  %v1777_v46 = vld [vmem:[%s2122_s7 + $0x68] sm:$0xff] }
 0x25d   : > { %v1069_v40 = vadd.f32 %v1981_v11, %v1068_v54  ;;  %vm1148_vm8 = vweird.f32 %v2734_v32  ;;  %vm1185_vm14 = vmpackc.low %vm1183_vm5, %vm1183_vm5  ;;  %v1198_v31 = vunpack.c.h.bf16 %v1777_v46 }
 0x25e   : > { %v2747_v50 = vsel %vm1182_vm9, %v1162_v22, %v2670_v28  ;;  %v1106_v17 = vmul.f32 %v1987_v45, %v1105_v42  ;;  %1992 = vtanh.f32 %v1162_v22  ;;  %v1115_v28 = vor.u32 1.1754944e-38, %v1114_v24 }
 0x25f   : > { %v1073_v61 = vsel %vm1072_vm13, %v1981_v11, %v1069_v40  ;;  %v1136_v63 = vsel %vm1135_vm3, %v2719_v52, %v1132_v53  ;;  %v1152_v52 = vand.u32 2147483647, %v2734_v32  ;;  %v1155_v11 = vor.u32 1.1754944e-38, %v1154_v36  ;;  %vm1184_vm13 = vmpackc.low %vm1182_vm9, %vm1182_vm9  ;;  %v2791_v36 = vpop.permute.xlu0 %1408 }
 0x260   : > { %v1989_v57 = vpop.eup %1988  ;;  %v1078_v0 = vsel %vm1075_vm15, %v1077_v1, %v1073_v61  ;;  %v1107_v58 = vadd.f32 %v1987_v45, %v1106_v17  ;;  %v1141_v35 = vsel %vm1138_vm6, %v1140_v9, %v1136_v63  ;;  %vm1413_vm0 = vcmp.eq.s32.totalorder %v2791_v36, 1 }
 0x261   : > { %v1991_v7 = vpop.eup %1990  ;;  %v1144_v12 = vmul.f32 %v1989_v57, %v2734_v32  ;;  %vm1149_vm7 = vweird.f32 %v1989_v57  ;;  %vm1153_vm12 = vcmp.eq.f32.partialorder %v1152_v52, 8.507059e+37 }
 0x262   : > { %v1161_v8 = vmul.f32 %v1991_v7, %v1078_v0  ;;  %v1111_v5 = vsel %vm1110_vm4, %v1987_v45, %v1107_v58  ;;  %vm1150_vm10 = vmor %vm1148_vm8, %vm1149_vm7  ;;  %v1779_v0 = vld [vmem:[%s2122_s7 + $0x78] sm:$0xff]  ;;  %v1197_v7 = vunpack.c.l.bf16 %v1777_v46 }
 0x263   : > { %v1145_v10 = vsub.f32 1.0, %v1144_v12  ;;  %v1116_v39 = vsel %vm1113_vm2, %v1115_v28, %v1111_v5  ;;  %v1202_v53 = vunpack.c.h.bf16 %v1779_v0  ;;  %v1201_v9 = vunpack.c.l.bf16 %v1779_v0 }
 0x264   : > { %v1159_v18 = vmul.f32 %v1116_v39, %v2689_v19  ;;  %v1993_v25 = vpop.eup %1992 }
 0x265   : > { %v1146_v23 = vmul.f32 %v1989_v57, %v1145_v10  ;;  %v1166_v44 = vmul.f32 %v1993_v25, %v1141_v35 }
 0x266   : > { %v1163_v30 = vadd.f32 %v1161_v8, %v1159_v18 }
 0x267   : > { %v1147_v34 = vadd.f32 %v1989_v57, %v1146_v23  ;;  %v1172_v55 = vpack.c.bf16 %v1166_v44, %v1166_v44 }
 0x268   : > { %1994 = vtanh.f32 %v1163_v30  ;;  %v2762_v37 = vsel %vm1183_vm5, %v1163_v30, %v2689_v19 }
 0x269   : > { %v1151_v48 = vsel %vm1150_vm10, %v1989_v57, %v1147_v34  ;;  %v2770_v19 = vsel %vm1184_vm13, %v1172_v55, %v2697_v43  ;;  %v1776_v43 = vld [vmem:[%s2122_s7 + $0x60] sm:$0xff] }
 0x26a   : > { %v1156_v56 = vsel %vm1153_vm12, %v1155_v11, %v1151_v48  ;;  %v1205_v6 = vunpack.c.l.b16 %v2770_v19  ;;  %v1195_v38 = vunpack.c.l.bf16 %v1776_v43  ;;  %v1196_v26 = vunpack.c.h.bf16 %v1776_v43 }
 0x26e   : > { %v1995_v3 = vpop.eup %1994 }
 0x26f   : > { %v1167_v59 = vmul.f32 %v1995_v3, %v1156_v56 }
 0x271   : > { %v1173_v60 = vpack.c.bf16 %v1167_v59, %v1167_v59 }
 0x273   : > { %v2775_v4 = vsel %vm1185_vm14, %v1173_v60, %v2702_v47  ;;  %v1778_v47 = vld [vmem:[%s2122_s7 + $0x70] sm:$0xff] }
 0x274   : > { %v1206_v13 = vunpack.c.l.b16 %v2775_v4  ;;  %v1199_v51 = vunpack.c.l.bf16 %v1778_v47  ;;  %v1200_v21 = vunpack.c.h.bf16 %v1778_v47 }
 0x276   : > { %v1207_v15 = vpack.c.b16 %v1206_v13, %v1205_v6 }
 0x278   : > { %1217 = vmatmul.bf16.vlgmr.msrb.gmra.mxu0 %v1207_v15  ;;  %1231 = vmatmul.bf16.vlgmr.msrb.gmra.mxu1 %v1207_v15 }
 0x279   : > { %1245 = vmatmul.bf16.vlgmr.msrb.gmra.mxu2 %v1207_v15  ;;  %1259 = vmatmul.bf16.vlgmr.msrb.gmra.mxu3 %v1207_v15 }
 0x2f5   : > { %v1218_v27 = vpop.f32.mrf.mxu0  ;;  %v1232_v32 = vpop.f32.mrf.mxu1 }
 0x2f6   : > { %v1265_v33 = vadd.f32 %v1218_v27, %v1195_v38  ;;  %v1266_v45 = vadd.f32 %v1232_v32, %v1196_v26 }
 0x2f8   : > { %v1780_v49 = vmul.f32 -1.442695, %v1265_v33  ;;  %v1782_v2 = vmul.f32 -1.442695, %v1266_v45 }
 0x2fa   : > { %1996 = vpow2.f32 %v1780_v49 }
 0x2fb   : > { %1998 = vpow2.f32 %v1782_v2 }
 0x2fc   : > { %v1260_v54 = vpop.f32.mrf.mxu3  ;;  %v1246_v12 = vpop.f32.mrf.mxu2 }
 0x2fd   : > { %v1268_v29 = vadd.f32 %v1260_v54, %v1198_v31  ;;  %v1220_v42 = vpop.f32.mrf.mxu0  ;;  %v1234_v22 = vpop.f32.mrf.mxu1  ;;  %v1267_v62 = vadd.f32 %v1246_v12, %v1197_v7 }
 0x2fe   : > { %v1269_v16 = vadd.f32 %v1220_v42, %v1199_v51  ;;  %v1270_v40 = vadd.f32 %v1234_v22, %v1200_v21 }
 0x2ff   : > { %v1784_v1 = vmul.f32 -1.442695, %v1268_v29 }
 0x300   : > { %v1997_v24 = vpop.eup %1996  ;;  %v1781_v17 = vmul.f32 -1.442695, %v1269_v16  ;;  %v1783_v57 = vmul.f32 -1.442695, %v1270_v40 }
 0x301   : > { %v1999_v41 = vpop.eup %1998  ;;  %v1279_v61 = vadd.f32 1.0, %v1997_v24  ;;  %2000 = vpow2.f32 %v1784_v1 }
 0x302   : > { %v1317_v58 = vadd.f32 1.0, %v1999_v41  ;;  %2002 = vpow2.f32 %v1781_v17 }
 0x303   : > { %2004 = vrcp.f32 %v1279_v61  ;;  %v1290_v48 = vand.u32 2147483647, %v1279_v61  ;;  %v1292_v11 = vand.u32 2147483648, %v1279_v61  ;;  %vm1286_vm1 = vweird.f32 %v1279_v61 }
 0x304   : > { %2006 = vrcp.f32 %v1317_v58  ;;  %v1262_v28 = vpop.f32.mrf.mxu3  ;;  %v1330_v52 = vand.u32 2147483648, %v1317_v58  ;;  %v1248_v55 = vpop.f32.mrf.mxu2  ;;  %v1328_v56 = vand.u32 2147483647, %v1317_v58  ;;  %vm1324_vm4 = vweird.f32 %v1317_v58 }
 0x305   : > { %2008 = vpow2.f32 %v1783_v57  ;;  %v1272_v10 = vadd.f32 %v1262_v28, %v1202_v53  ;;  %v1271_v13 = vadd.f32 %v1248_v55, %v1201_v9  ;;  %v1293_v43 = vor.u32 1.1754944e-38, %v1292_v11 }
 0x306   : > { %v1331_v32 = vor.u32 1.1754944e-38, %v1330_v52  ;;  %vm1291_vm3 = vcmp.eq.f32.partialorder %v1290_v48, 8.507059e+37  ;;  %vm1329_vm5 = vcmp.eq.f32.partialorder %v1328_v56, 8.507059e+37 }
 0x307   : > { %v2001_v8 = vpop.eup %2000  ;;  %v1785_v35 = vmul.f32 -1.442695, %v1272_v10 }
 0x308   : > { %v2003_v20 = vpop.eup %2002  ;;  %v2783_v5 = vadd.f32 1.0, %v2001_v8 }
 0x309   : > { %v2005_v14 = vpop.eup %2004  ;;  %v2785_v39 = vadd.f32 1.0, %v2003_v20 }
 0x30a   : > { %v2007_v18 = vpop.eup %2006  ;;  %v1282_v63 = vmul.f32 %v2005_v14, %v1279_v61  ;;  %2010 = vrcp.f32 %v2783_v5  ;;  %vm1287_vm9 = vweird.f32 %v2005_v14  ;;  %vm1364_vm6 = vweird.f32 %v2783_v5 }
 0x30b   : > { %v2009_v23 = vpop.eup %2008  ;;  %v1320_v25 = vmul.f32 %v2007_v18, %v1317_v58  ;;  %2012 = vtanh.f32 %v1267_v62  ;;  %vm1325_vm15 = vweird.f32 %v2007_v18  ;;  %vm1288_vm2 = vmor %vm1286_vm1, %vm1287_vm9  ;;  %v1370_v16 = vand.u32 2147483648, %v2783_v5 }
 0x30c   : > { %v1283_v30 = vsub.f32 1.0, %v1282_v63  ;;  %2014 = vrcp.f32 %v2785_v39  ;;  %v2789_v34 = vadd.f32 1.0, %v2009_v23  ;;  %vm1326_vm11 = vmor %vm1324_vm4, %vm1325_vm15  ;;  %v1305_v1 = vand.u32 2147483647, %v2785_v39 }
 0x30d   : > { %v1321_v44 = vsub.f32 1.0, %v1320_v25  ;;  %v1307_v24 = vand.u32 2147483648, %v2785_v39  ;;  %v1368_v8 = vand.u32 2147483647, %v2783_v5  ;;  %vm1301_vm13 = vweird.f32 %v2785_v39 }
 0x30e   : > { %v1284_v3 = vmul.f32 %v2005_v14, %v1283_v30  ;;  %2016 = vrcp.f32 %v2789_v34  ;;  %v1345_v40 = vand.u32 2147483648, %v2789_v34  ;;  %v1343_v0 = vand.u32 2147483647, %v2789_v34  ;;  %v1412_v30 = vpop.permute.xlu1 %1411 }
 0x30f   : > { %v1322_v59 = vmul.f32 %v2007_v18, %v1321_v44  ;;  %2018 = vpow2.f32 %v1785_v35  ;;  %vm1339_vm14 = vweird.f32 %v2789_v34  ;;  %vm1306_vm1 = vcmp.eq.f32.partialorder %v1305_v1, 8.507059e+37 }
 0x310   : > { %v2794_v60 = vpop.eup %2010  ;;  %v1285_v6 = vadd.f32 %v2005_v14, %v1284_v3  ;;  %2020 = vtanh.f32 %v1271_v13  ;;  %v1371_v63 = vor.u32 1.1754944e-38, %v1370_v16  ;;  %vm1344_vm4 = vcmp.eq.f32.partialorder %v1343_v0, 8.507059e+37 }
 0x311   : > { %v2013_v15 = vpop.eup %2012  ;;  %v1323_v38 = vadd.f32 %v2007_v18, %v1322_v59  ;;  %v1360_v26 = vmul.f32 %v2794_v60, %v2783_v5  ;;  %vm1365_vm7 = vweird.f32 %v2794_v60 }
 0x312   : > { %v2015_v27 = vpop.eup %2014  ;;  %v1289_v33 = vsel %vm1288_vm2, %v2005_v14, %v1285_v6  ;;  %vm2816_vm12 = vmor %vm1364_vm6, %vm1365_vm7  ;;  %v1346_v14 = vor.u32 1.1754944e-38, %v1345_v40  ;;  %vm1369_vm2 = vcmp.eq.f32.partialorder %v1368_v8, 8.507059e+37 }
 0x313   : > { %v1294_v45 = vsel %vm1291_vm3, %v1293_v43, %v1289_v33  ;;  %v1327_v46 = vsel %vm1326_vm11, %v2007_v18, %v1323_v38  ;;  %v1361_v47 = vsub.f32 1.0, %v1360_v26  ;;  %v1297_v49 = vmul.f32 %v2015_v27, %v2785_v39  ;;  %vm1415_vm3 = vmpackc.low %vm1413_vm0, %vm1413_vm0 }
 0x314   : > { %v2017_v2 = vpop.eup %2016  ;;  %v1332_v31 = vsel %vm1329_vm5, %v1331_v32, %v1327_v46  ;;  %v1391_v51 = vmul.f32 %v2013_v15, %v1294_v45  ;;  %vm1302_vm8 = vweird.f32 %v2015_v27  ;;  %vm1414_vm11 = vcmp.eq.s32.totalorder %v1412_v30, 1 }
 0x315   : > { %v1389_v21 = vmul.f32 %v1332_v31, %v2747_v50  ;;  %v1362_v54 = vmul.f32 %v2794_v60, %v1361_v47  ;;  %v1298_v29 = vsub.f32 1.0, %v1297_v49  ;;  %v1335_v42 = vmul.f32 %v2017_v2, %v2789_v34  ;;  %v2019_v22 = vpop.eup %2018  ;;  %vm1303_vm9 = vmor %vm1301_vm13, %vm1302_vm8 }
 0x316   : > { %v1358_v58 = vadd.f32 1.0, %v2019_v22  ;;  %vm1340_vm10 = vweird.f32 %v2017_v2  ;;  %v2021_v53 = vpop.eup %2020  ;;  %vm1416_vm8 = vmpackc.low %vm1414_vm11, %vm1414_vm11 }
 0x317   : > { %v1393_v17 = vadd.f32 %v1391_v51, %v1389_v21  ;;  %v1336_v41 = vsub.f32 1.0, %v1335_v42  ;;  %v1299_v61 = vmul.f32 %v2015_v27, %v1298_v29  ;;  %v1363_v57 = vadd.f32 %v2794_v60, %v1362_v54  ;;  %vm1341_vm15 = vmor %vm1339_vm14, %vm1340_vm10 }
 0x318   : > { %v1383_v13 = vand.u32 2147483647, %v1358_v58  ;;  %vm1379_vm6 = vweird.f32 %v1358_v58 }
 0x319   : > { %2022 = vtanh.f32 %v1393_v17  ;;  %v1419_v7 = vsel %vm1413_vm0, %v1393_v17, %v2747_v50  ;;  %v1337_v12 = vmul.f32 %v2017_v2, %v1336_v41  ;;  %v1300_v62 = vadd.f32 %v2015_v27, %v1299_v61 }
 0x31a   : > { %1423 = vst [vmem:[#allocation3] sm:$0xff] %v1419_v7  ;;  %2024 = vrcp.f32 %v1358_v58  ;;  %v1308_v50 = vor.u32 1.1754944e-38, %v1307_v24  ;;  %v1367_v10 = vsel %vm2816_vm12, %v2794_v60, %v1363_v57  ;;  %v1385_v60 = vand.u32 2147483648, %v1358_v58 }
 0x31b   : > { %v1338_v20 = vadd.f32 %v2017_v2, %v1337_v12  ;;  %v1304_v18 = vsel %vm1303_vm9, %v2015_v27, %v1300_v62  ;;  %v1372_v34 = vsel %vm1369_vm2, %v1371_v63, %v1367_v10  ;;  %vm1384_vm0 = vcmp.eq.f32.partialorder %v1383_v13, 8.507059e+37 }
 0x31c   : > { %v1309_v5 = vsel %vm1306_vm1, %v1308_v50, %v1304_v18  ;;  %v1386_v43 = vor.u32 1.1754944e-38, %v1385_v60 }
 0x31d   : > { %v1342_v23 = vsel %vm1341_vm15, %v2017_v2, %v1338_v20  ;;  %v1392_v25 = vmul.f32 %v2021_v53, %v1309_v5 }
 0x31e   : > { %v1347_v39 = vsel %vm1344_vm4, %v1346_v14, %v1342_v23 }
 0x31f   : > { %v2023_v9 = vpop.eup %2022  ;;  %v1390_v35 = vmul.f32 %v1347_v39, %v2762_v37 }
 0x320   : > { %v2025_v44 = vpop.eup %2024  ;;  %v1397_v52 = vmul.f32 %v2023_v9, %v1372_v34 }
 0x321   : > { %v1394_v48 = vadd.f32 %v1392_v25, %v1390_v35  ;;  %v1375_v11 = vmul.f32 %v2025_v44, %v1358_v58  ;;  %vm1380_vm5 = vweird.f32 %v2025_v44 }
 0x322   : > { %v1403_v55 = vpack.c.bf16 %v1397_v52, %v1397_v52  ;;  %vm1381_vm7 = vmor %vm1379_vm6, %vm1380_vm5 }
 0x323   : > { %2026 = vtanh.f32 %v1394_v48  ;;  %v1420_v3 = vsel %vm1414_vm11, %v1394_v48, %v2762_v37  ;;  %v1376_v56 = vsub.f32 1.0, %v1375_v11 }
 0x324   : > { %v1417_v59 = vsel %vm1415_vm3, %v1403_v55, %v2770_v19  ;;  %1424 = vst [vmem:[#allocation3 + $0x8] sm:$0xff] %v1420_v3 }
 0x325   : > { %1421 = vst [vmem:[#allocation2] sm:$0xf] %v1417_v59  ;;  %v1377_v6 = vmul.f32 %v2025_v44, %v1376_v56 }
 0x327   : > { %v1378_v15 = vadd.f32 %v2025_v44, %v1377_v6 }
 0x329   : > { %v2027_v36 = vpop.eup %2026  ;;  %v1382_v38 = vsel %vm1381_vm7, %v2025_v44, %v1378_v15 }
 0x32a   : > { %v1387_v26 = vsel %vm1384_vm0, %v1386_v43, %v1382_v38 }
 0x32b   : > { %v1398_v27 = vmul.f32 %v2027_v36, %v1387_v26 }
 0x32d   : > { %v1404_v32 = vpack.c.bf16 %v1398_v27, %v1398_v27 }
 0x32f   : > { %v1418_v37 = vsel %vm1416_vm8, %v1404_v32, %v2775_v4 }
 0x330   : > { %1422 = vst [vmem:[#allocation2 + $0x4] sm:$0xf] %v1418_v37 }
 0x331 PF: > { %p1786_p7 = scmp.ne.s32.totalorder %s2043_s23, 1 }
 0x333   : > { %1428 = sbr.rel (%p1786_p7) target bundleno = 993 (0x3e1), region = 52 }
 0x338   : > { %v1869_v19 = vld [vmem:[%s2884_s4 + $0x38] sm:$0xff]  ;;  %v1868_v33 = vld [vmem:[%s2884_s4 + $0x30] sm:$0xff]  ;;  %v1867_v45 = vld [vmem:[%s2884_s4 + $0x28] sm:$0xff] }
 0x339   : > { %1505 = vmatpush.bf16.msra.mxu0 %v1869_v19  ;;  %v1866_v4 = vld [vmem:[%s2884_s4 + $0x20] sm:$0xff]  ;;  %v1865_v46 = vld [vmem:[%s2884_s4 + $0x18] sm:$0xff]  ;;  %v1864_v47 = vld [vmem:[%s2884_s4 + $0x10] sm:$0xff] }
 0x33a   : > { %v1863_v49 = vld [vmem:[%s2884_s4 + $0x8] sm:$0xff]  ;;  %v1862_v2 = vld [vmem:[%s2884_s4] sm:$0xff] }
 0x33b   : > { %v1861_v31 = vld [vmem:[#allocation2] sm:$0xff] }
 0x33c   : > { %v2028_v51 = vld [vmem:[%s2885_s5] ss:$0 sm:$0xff] }
 0x33d   : > { %1506 = vmatpush.bf16.msra.mxu0 %v1868_v33 }
 0x341   : > { %1507 = vmatpush.bf16.msra.mxu0 %v1867_v45 }
 0x345   : > { %1508 = vmatpush.bf16.msra.mxu0 %v1866_v4 }
 0x349   : > { %1509 = vmatpush.bf16.msra.mxu0 %v1865_v46 }
 0x34d   : > { %1510 = vmatpush.bf16.msra.mxu0 %v1864_v47 }
 0x351   : > { %1511 = vmatpush.bf16.msra.mxu0 %v1863_v49 }
 0x355   : > { %1512 = vmatpush.bf16.msra.mxu0 %v1862_v2 }
 0x358   : > { %1513 = vmatmul.bf16.vlgmr.msra.gmra.mxu0 %v1861_v31 }
 0x3d5   : > { %v1514_v21 = vpop.f32.mrf.mxu0 }
 0x3d6   : > { %v1515_v54 = vadd.f32 %v2028_v51, %v1514_v21 }
 0x3d8   : > { %1519 = vst [vmem:[%s2886_s6] sm:$0xff] %v1515_v54 }
 0x3dd   : > { %v1516_v29 = vpop.f32.mrf.mxu0 }
 0x3de   : > { %v1517_v42 = vadd.f32 %v2028_v51, %v1516_v29 }
 0x3e0   : > { %1520 = vst [vmem:[%s2886_s6 + $0x8] sm:$0xff] %v1517_v42 }
 0x3e1 PF: > { %s17_s25 = sadd.s32 1, %s2051_s25   ;;  %s2906_s23 = smov %s2047_s24 }
 0x3e2   : > { %p14_p8 = scmp.ge.s32.totalorder %s17_s25, 4   ;;  %s2907_s24 = smov %s2909_s0 }
 0x3e4   :  { %16 = sbr.rel (!%p14_p8) target bundleno = 2 (0x2), region = 88 }

</bundles_post_ra>
